<compile_context>
chip_gen: v7x
topology: tpu7x:2x2x1
jax: 0.10.0
libtpu: 0.0.40
codegen_flags: <defaults>
</compile_context>

<pallas_src>
import jax
import jax.numpy as jnp
from jax.experimental import pallas as pl
from jax.experimental.pallas import tpu as pltpu

# Layer sizes from the module's __init__ and their lane-padded counterparts.
DIMS = [784, 520, 320, 240, 120, 10]
PDIMS = [784, 520, 320, 256, 128, 128]
NUM_LAYERS = len(DIMS) - 1

# Batch tile (MXU M dim).
TILE_B = 1024
VMEM_LIMIT_BYTES = 32 * 1024 * 1024   # raise v5e's 16 MiB scoped default


def _round_up(x, m):
    return ((x + m - 1) // m) * m


def mlp_kernel(x_ref,
               w1_ref, b1_ref,
               w2_ref, b2_ref,
               w3_ref, b3_ref,
               w4_ref, b4_ref,
               w5_ref, b5_ref,
               o_ref):
    """One batch tile of the 5-layer MLP.

    Weights (bf16, ~1.4 MB total) are VMEM-resident across all grid steps;
    the (tile_b, 784) bf16 activation tile streams through the pipeline.
    Dots run bf16 x bf16 on the MXU with f32 accumulation; bias-add / ReLU
    are done in f32 and only the stored inter-layer activation is bf16.
    """

    def linear_f32(h, w_ref, b_ref):
        return jnp.dot(h, w_ref[...],
                       preferred_element_type=jnp.float32) + b_ref[...]

    h = x_ref[...]                                                   # bf16
    h = jnp.maximum(linear_f32(h, w1_ref, b1_ref), 0.0).astype(jnp.bfloat16)
    h = jnp.maximum(linear_f32(h, w2_ref, b2_ref), 0.0).astype(jnp.bfloat16)
    h = jnp.maximum(linear_f32(h, w3_ref, b3_ref), 0.0).astype(jnp.bfloat16)
    h = jnp.maximum(linear_f32(h, w4_ref, b4_ref), 0.0).astype(jnp.bfloat16)
    # Final layer: logits, no activation. Lane-dense (128-col) f32 store.
    o_ref[...] = linear_f32(h, w5_ref, b5_ref)


def prepare_params(params):
    """One-time, model-load-time preprocessing (NOT in the per-call path):
      * transpose PyTorch (out, in) weights to (in, out),
      * zero-pad 240->256, 120->128, 10->128 (and matching rows of the next
        layer),
      * cast weights to bf16 (biases stay f32).
    Returns a flat tuple (w1, b1, ..., w5, b5)."""
    flat = []
    for i, (w, b) in enumerate(params):
        din, dout = DIMS[i], DIMS[i + 1]
        pin, pout = PDIMS[i], PDIMS[i + 1]
        wt = jnp.asarray(w, jnp.float32).T                       # (din, dout)
        wt = jnp.pad(wt, ((0, pin - din), (0, pout - dout)))     # zero-pad
        flat.append(wt.astype(jnp.bfloat16))
        bb = jnp.pad(jnp.asarray(b, jnp.float32), (0, pout - dout))
        flat.append(bb.reshape(1, pout))
    return tuple(flat)


@jax.jit
def net_forward(x, prepped):
    """x: (B, 1, 28, 28) or (B, 784). prepped: output of prepare_params()."""
    B = x.shape[0]
    # torch .view(-1, 784); stream activations as bf16 (f32 accumulation in
    # the kernel keeps numerics on the same bf16-operand path as before).
    x2d = x.reshape(B, DIMS[0]).astype(jnp.bfloat16)

    # Batch tiling: large tiles for throughput; tiny B is padded to one
    # 16-sublane-aligned tile (bf16 packs 16 rows per vreg). Remainder batches
    # are zero-padded and sliced off.
    tile_b = TILE_B if B >= TILE_B else _round_up(max(B, 16), 16)
    Bp = _round_up(B, tile_b)
    if Bp != B:
        x2d = jnp.pad(x2d, ((0, Bp - B), (0, 0)))
    grid = (Bp // tile_b,)

    const_map = lambda i: (0, 0)        # weights/biases: resident, no re-DMA
    in_specs = [pl.BlockSpec((tile_b, PDIMS[0]), lambda i: (i, 0))]
    for li in range(NUM_LAYERS):
        pin, pout = PDIMS[li], PDIMS[li + 1]
        in_specs.append(pl.BlockSpec((pin, pout), const_map))    # W (bf16)
        in_specs.append(pl.BlockSpec((1, pout), const_map))      # b (f32)
    out_spec = pl.BlockSpec((tile_b, PDIMS[-1]), lambda i: (i, 0))

    # Advisory cost estimate so XLA schedules this custom call sensibly.
    flops = 2 * Bp * sum(PDIMS[i] * PDIMS[i + 1] for i in range(NUM_LAYERS))
    w_bytes = sum(PDIMS[i] * PDIMS[i + 1] * 2 for i in range(NUM_LAYERS))
    b_bytes = sum(PDIMS[i + 1] * 4 for i in range(NUM_LAYERS))
    io_bytes = Bp * PDIMS[0] * 2 + Bp * PDIMS[-1] * 4   # bf16 in, f32 out

    out_pad = pl.pallas_call(
        mlp_kernel,
        out_shape=jax.ShapeDtypeStruct((Bp, PDIMS[-1]), jnp.float32),
        grid=grid,
        in_specs=in_specs,
        out_specs=out_spec,
        compiler_params=pltpu.CompilerParams(
            dimension_semantics=("parallel",),      # megacore split on v7x
            vmem_limit_bytes=VMEM_LIMIT_BYTES),     # TILE_B=1024 fits on v5e
        cost_estimate=pl.CostEstimate(
            flops=flops,
            transcendentals=0,
            bytes_accessed=w_bytes + b_bytes + io_bytes),
    )(x2d, *prepped)

    # Drop padded batch rows and padded output lanes (128 -> 10).
    return out_pad[:B, :DIMS[-1]]


def init_params(key):
    """Deterministic synthetic parameters with PyTorch Linear shapes:
    W: (out_features, in_features), b: (out_features,)."""
    params = []
    for i in range(NUM_LAYERS):
        fan_in, fan_out = DIMS[i], DIMS[i + 1]
        key, kw, kb = jax.random.split(key, 3)
        bound = 1.0 / jnp.sqrt(fan_in)
        w = jax.random.uniform(kw, (fan_out, fan_in), jnp.float32, -bound, bound)
        b = jax.random.uniform(kb, (fan_out,), jnp.float32, -bound, bound)
        params.append((w, b))
    return params


def reference_forward(x, params):
    """Pure-JAX f32 reference reproducing the PyTorch forward exactly."""
    B = x.shape[0]
    h = x.reshape(B, DIMS[0]).astype(jnp.float32)
    for i, (w, b) in enumerate(params):
        h = h @ w.T + b
        if i < len(params) - 1:
            h = jnp.maximum(h, 0.0)
    return h


def reference_forward_prepped(x, prepped):
    """Pure-JAX reference mirroring the kernel's precision path exactly
    (bf16 operands for every dot, f32 accumulation + bias + ReLU, bf16
    inter-layer activations, padded widths)."""
    B = x.shape[0]
    h = x.reshape(B, DIMS[0]).astype(jnp.bfloat16)
    ws, bs = prepped[0::2], prepped[1::2]
    y = None
    for i, (w, b) in enumerate(zip(ws, bs)):
        y = jnp.dot(h, w, preferred_element_type=jnp.float32) + b
        if i < len(ws) - 1:
            h = jnp.maximum(y, 0.0).astype(jnp.bfloat16)
    return y[:, :DIMS[-1]]


if __name__ == "__main__":
    key = jax.random.PRNGKey(0)
    key, kx = jax.random.split(key)

    # Small MNIST-like batch, NCHW like PyTorch.
    B = 2
    x = jax.random.normal(kx, (B, 1, 28, 28), jnp.float32)

    params = init_params(key)
    prepped = prepare_params(params)   # one-time: transpose + pad + bf16 cast

    out = net_forward(x, prepped)
    out = jax.block_until_ready(out)
    assert out.shape == (B, 10), out.shape

    # Tight check vs a same-precision (bf16-operand) reference.
    ref_bf16 = reference_forward_prepped(x, prepped)
    assert jnp.allclose(out, ref_bf16, atol=1e-2, rtol=1e-2), \
        "mismatch vs bf16-path reference"

    # Loose check vs the full-f32 PyTorch-equivalent reference (bf16 operands
    # introduce ~0.2-0.5% relative error).
    ref_f32 = reference_forward(x, params)
    assert jnp.allclose(out, ref_f32, atol=1e-1, rtol=1e-1), \
        "mismatch vs f32 reference"

    print("KERNEL_OK")
</pallas_src>

<mosaic_0001>
module attributes {stable_mosaic.version = 11 : i64} {
  func.func @mlp_kernel(%arg0: i32, %arg1: memref<16x784xbf16, #tpu.memory_space<vmem>>, %arg2: memref<784x520xbf16, #tpu.memory_space<vmem>>, %arg3: memref<1x520xf32, #tpu.memory_space<vmem>>, %arg4: memref<520x320xbf16, #tpu.memory_space<vmem>>, %arg5: memref<1x320xf32, #tpu.memory_space<vmem>>, %arg6: memref<320x256xbf16, #tpu.memory_space<vmem>>, %arg7: memref<1x256xf32, #tpu.memory_space<vmem>>, %arg8: memref<256x128xbf16, #tpu.memory_space<vmem>>, %arg9: memref<1x128xf32, #tpu.memory_space<vmem>>, %arg10: memref<128x128xbf16, #tpu.memory_space<vmem>>, %arg11: memref<1x128xf32, #tpu.memory_space<vmem>>, %arg12: memref<16x128xf32, #tpu.memory_space<vmem>>) attributes {dimension_semantics = [#tpu.dimension_semantics<parallel>], iteration_bounds = array<i64: 1>, scalar_prefetch = 0 : i64, scratch_operands = 0 : i64, tpu.core_type = #tpu.core_type<tc>, window_params = [{transform_indices = @transform_0, window_bounds = array<i64: 16, 784>}, {pipeline_mode = #tpu.pipeline_mode<synchronous>, transform_indices = @transform_1, window_bounds = array<i64: 784, 520>}, {pipeline_mode = #tpu.pipeline_mode<synchronous>, transform_indices = @transform_2, window_bounds = array<i64: 1, 520>}, {pipeline_mode = #tpu.pipeline_mode<synchronous>, transform_indices = @transform_3, window_bounds = array<i64: 520, 320>}, {pipeline_mode = #tpu.pipeline_mode<synchronous>, transform_indices = @transform_4, window_bounds = array<i64: 1, 320>}, {pipeline_mode = #tpu.pipeline_mode<synchronous>, transform_indices = @transform_5, window_bounds = array<i64: 320, 256>}, {pipeline_mode = #tpu.pipeline_mode<synchronous>, transform_indices = @transform_6, window_bounds = array<i64: 1, 256>}, {pipeline_mode = #tpu.pipeline_mode<synchronous>, transform_indices = @transform_7, window_bounds = array<i64: 256, 128>}, {pipeline_mode = #tpu.pipeline_mode<synchronous>, transform_indices = @transform_8, window_bounds = array<i64: 1, 128>}, {pipeline_mode = #tpu.pipeline_mode<synchronous>, transform_indices = @transform_9, window_bounds = array<i64: 128, 128>}, {pipeline_mode = #tpu.pipeline_mode<synchronous>, transform_indices = @transform_10, window_bounds = array<i64: 1, 128>}, {transform_indices = @transform_11, window_bounds = array<i64: 16, 128>}]} {
    %c0 = arith.constant 0 : index
    %c0_0 = arith.constant 0 : index
    %0 = vector.load %arg1[%c0, %c0_0] : memref<16x784xbf16, #tpu.memory_space<vmem>>, vector<16x784xbf16>
    %c0_1 = arith.constant 0 : index
    %c0_2 = arith.constant 0 : index
    %1 = vector.load %arg2[%c0_1, %c0_2] : memref<784x520xbf16, #tpu.memory_space<vmem>>, vector<784x520xbf16>
    %cst = arith.constant dense<0.000000e+00> : vector<16x520xf32>
    %2 = tpu.matmul %0, %1, %cst {dimension_numbers = #tpu.dot_dimension_numbers<[1], [0], [0], [1], [0, 0, 1, 1], [], []>} : vector<16x784xbf16>, vector<784x520xbf16>, vector<16x520xf32> -> vector<16x520xf32>
    %c0_3 = arith.constant 0 : index
    %c0_4 = arith.constant 0 : index
    %3 = vector.load %arg3[%c0_3, %c0_4] : memref<1x520xf32, #tpu.memory_space<vmem>>, vector<1x520xf32>
    %4 = vector.broadcast %3 : vector<1x520xf32> to vector<16x520xf32>
    %5 = arith.addf %2, %4 : vector<16x520xf32>
    %cst_5 = arith.constant 0.000000e+00 : f32
    %6 = vector.broadcast %cst_5 : f32 to vector<16x520xf32>
    %7 = arith.maximumf %5, %6 : vector<16x520xf32>
    %8 = arith.truncf %7 : vector<16x520xf32> to vector<16x520xbf16>
    %c0_6 = arith.constant 0 : index
    %c0_7 = arith.constant 0 : index
    %9 = vector.load %arg4[%c0_6, %c0_7] : memref<520x320xbf16, #tpu.memory_space<vmem>>, vector<520x320xbf16>
    %cst_8 = arith.constant dense<0.000000e+00> : vector<16x320xf32>
    %10 = tpu.matmul %8, %9, %cst_8 {dimension_numbers = #tpu.dot_dimension_numbers<[1], [0], [0], [1], [0, 0, 1, 1], [], []>} : vector<16x520xbf16>, vector<520x320xbf16>, vector<16x320xf32> -> vector<16x320xf32>
    %c0_9 = arith.constant 0 : index
    %c0_10 = arith.constant 0 : index
    %11 = vector.load %arg5[%c0_9, %c0_10] : memref<1x320xf32, #tpu.memory_space<vmem>>, vector<1x320xf32>
    %12 = vector.broadcast %11 : vector<1x320xf32> to vector<16x320xf32>
    %13 = arith.addf %10, %12 : vector<16x320xf32>
    %cst_11 = arith.constant 0.000000e+00 : f32
    %14 = vector.broadcast %cst_11 : f32 to vector<16x320xf32>
    %15 = arith.maximumf %13, %14 : vector<16x320xf32>
    %16 = arith.truncf %15 : vector<16x320xf32> to vector<16x320xbf16>
    %c0_12 = arith.constant 0 : index
    %c0_13 = arith.constant 0 : index
    %17 = vector.load %arg6[%c0_12, %c0_13] : memref<320x256xbf16, #tpu.memory_space<vmem>>, vector<320x256xbf16>
    %cst_14 = arith.constant dense<0.000000e+00> : vector<16x256xf32>
    %18 = tpu.matmul %16, %17, %cst_14 {dimension_numbers = #tpu.dot_dimension_numbers<[1], [0], [0], [1], [0, 0, 1, 1], [], []>} : vector<16x320xbf16>, vector<320x256xbf16>, vector<16x256xf32> -> vector<16x256xf32>
    %c0_15 = arith.constant 0 : index
    %c0_16 = arith.constant 0 : index
    %19 = vector.load %arg7[%c0_15, %c0_16] : memref<1x256xf32, #tpu.memory_space<vmem>>, vector<1x256xf32>
    %20 = vector.broadcast %19 : vector<1x256xf32> to vector<16x256xf32>
    %21 = arith.addf %18, %20 : vector<16x256xf32>
    %cst_17 = arith.constant 0.000000e+00 : f32
    %22 = vector.broadcast %cst_17 : f32 to vector<16x256xf32>
    %23 = arith.maximumf %21, %22 : vector<16x256xf32>
    %24 = arith.truncf %23 : vector<16x256xf32> to vector<16x256xbf16>
    %c0_18 = arith.constant 0 : index
    %c0_19 = arith.constant 0 : index
    %25 = vector.load %arg8[%c0_18, %c0_19] : memref<256x128xbf16, #tpu.memory_space<vmem>>, vector<256x128xbf16>
    %cst_20 = arith.constant dense<0.000000e+00> : vector<16x128xf32>
    %26 = tpu.matmul %24, %25, %cst_20 {dimension_numbers = #tpu.dot_dimension_numbers<[1], [0], [0], [1], [0, 0, 1, 1], [], []>} : vector<16x256xbf16>, vector<256x128xbf16>, vector<16x128xf32> -> vector<16x128xf32>
    %c0_21 = arith.constant 0 : index
    %c0_22 = arith.constant 0 : index
    %27 = vector.load %arg9[%c0_21, %c0_22] : memref<1x128xf32, #tpu.memory_space<vmem>>, vector<1x128xf32>
    %28 = vector.broadcast %27 : vector<1x128xf32> to vector<16x128xf32>
    %29 = arith.addf %26, %28 : vector<16x128xf32>
    %cst_23 = arith.constant 0.000000e+00 : f32
    %30 = vector.broadcast %cst_23 : f32 to vector<16x128xf32>
    %31 = arith.maximumf %29, %30 : vector<16x128xf32>
    %32 = arith.truncf %31 : vector<16x128xf32> to vector<16x128xbf16>
    %c0_24 = arith.constant 0 : index
    %c0_25 = arith.constant 0 : index
    %33 = vector.load %arg10[%c0_24, %c0_25] : memref<128x128xbf16, #tpu.memory_space<vmem>>, vector<128x128xbf16>
    %cst_26 = arith.constant dense<0.000000e+00> : vector<16x128xf32>
    %34 = tpu.matmul %32, %33, %cst_26 {dimension_numbers = #tpu.dot_dimension_numbers<[1], [0], [0], [1], [0, 0, 1, 1], [], []>} : vector<16x128xbf16>, vector<128x128xbf16>, vector<16x128xf32> -> vector<16x128xf32>
    %c0_27 = arith.constant 0 : index
    %c0_28 = arith.constant 0 : index
    %35 = vector.load %arg11[%c0_27, %c0_28] : memref<1x128xf32, #tpu.memory_space<vmem>>, vector<1x128xf32>
    %36 = vector.broadcast %35 : vector<1x128xf32> to vector<16x128xf32>
    %37 = arith.addf %34, %36 : vector<16x128xf32>
    %c0_29 = arith.constant 0 : index
    %c0_30 = arith.constant 0 : index
    %38 = vector.load %arg12[%c0_29, %c0_30] : memref<16x128xf32, #tpu.memory_space<vmem>>, vector<16x128xf32>
    tpu.vector_store %arg12[%c0_29, %c0_30], %37 {strides = array<i32>} : memref<16x128xf32, #tpu.memory_space<vmem>>, vector<16x128xf32>,
    return
  }
  func.func @transform_0(%arg0: i32) -> (i32, i32) {
    %c0_i32 = arith.constant 0 : i32
    %c0_i32_0 = arith.constant 0 : i32
    return %arg0, %c0_i32 : i32, i32
  }
  func.func @transform_1(%arg0: i32) -> (i32, i32) {
    %c0_i32 = arith.constant 0 : i32
    %c0_i32_0 = arith.constant 0 : i32
    %c0_i32_1 = arith.constant 0 : i32
    return %c0_i32, %c0_i32_0 : i32, i32
  }
  func.func @transform_2(%arg0: i32) -> (i32, i32) {
    %c0_i32 = arith.constant 0 : i32
    %c0_i32_0 = arith.constant 0 : i32
    %c0_i32_1 = arith.constant 0 : i32
    return %c0_i32, %c0_i32_0 : i32, i32
  }
  func.func @transform_3(%arg0: i32) -> (i32, i32) {
    %c0_i32 = arith.constant 0 : i32
    %c0_i32_0 = arith.constant 0 : i32
    %c0_i32_1 = arith.constant 0 : i32
    return %c0_i32, %c0_i32_0 : i32, i32
  }
  func.func @transform_4(%arg0: i32) -> (i32, i32) {
    %c0_i32 = arith.constant 0 : i32
    %c0_i32_0 = arith.constant 0 : i32
    %c0_i32_1 = arith.constant 0 : i32
    return %c0_i32, %c0_i32_0 : i32, i32
  }
  func.func @transform_5(%arg0: i32) -> (i32, i32) {
    %c0_i32 = arith.constant 0 : i32
    %c0_i32_0 = arith.constant 0 : i32
    %c0_i32_1 = arith.constant 0 : i32
    return %c0_i32, %c0_i32_0 : i32, i32
  }
  func.func @transform_6(%arg0: i32) -> (i32, i32) {
    %c0_i32 = arith.constant 0 : i32
    %c0_i32_0 = arith.constant 0 : i32
    %c0_i32_1 = arith.constant 0 : i32
    return %c0_i32, %c0_i32_0 : i32, i32
  }
  func.func @transform_7(%arg0: i32) -> (i32, i32) {
    %c0_i32 = arith.constant 0 : i32
    %c0_i32_0 = arith.constant 0 : i32
    %c0_i32_1 = arith.constant 0 : i32
    return %c0_i32, %c0_i32_0 : i32, i32
  }
  func.func @transform_8(%arg0: i32) -> (i32, i32) {
    %c0_i32 = arith.constant 0 : i32
    %c0_i32_0 = arith.constant 0 : i32
    %c0_i32_1 = arith.constant 0 : i32
    return %c0_i32, %c0_i32_0 : i32, i32
  }
  func.func @transform_9(%arg0: i32) -> (i32, i32) {
    %c0_i32 = arith.constant 0 : i32
    %c0_i32_0 = arith.constant 0 : i32
    %c0_i32_1 = arith.constant 0 : i32
    return %c0_i32, %c0_i32_0 : i32, i32
  }
  func.func @transform_10(%arg0: i32) -> (i32, i32) {
    %c0_i32 = arith.constant 0 : i32
    %c0_i32_0 = arith.constant 0 : i32
    %c0_i32_1 = arith.constant 0 : i32
    return %c0_i32, %c0_i32_0 : i32, i32
  }
  func.func @transform_11(%arg0: i32) -> (i32, i32) {
    %c0_i32 = arith.constant 0 : i32
    %c0_i32_0 = arith.constant 0 : i32
    return %arg0, %c0_i32 : i32, i32
  }
}

</mosaic_0001>

<bundles_post_ra>
// kernel: net_forward.1
= control target key start
LH: loop header
LB: loop body
LE: loop exit
PB: predicated region body
PF: predicated region fallthrough
CT: control target
= control target key end

     0   :  { %vm1677_vm0 = vcmask 130048   ;;  %vm5019_vm1 = vmmov 0   ;;  %vm2875_vm2 = vcmask 1043456   ;;  %vm2871_vm3 = vcmask 64512   ;;  %s6441_s1 = inlined_call_operand.vmem [shape: bf16[784,520], index: 1, kind: input, shape index: {}]   ;;  %s6442_s0 = inlined_call_operand.vmem [shape: bf16[16,784], index: 0, kind: input, shape index: {}]   ;;  %s6443_s3 = inlined_call_operand.vmem [shape: bf16[520,320], index: 3, kind: input, shape index: {}]   ;;  %s6444_s2 = inlined_call_operand.vmem [shape: f32[1,520], index: 2, kind: input, shape index: {}]   ;;  %s6445_s5 = inlined_call_operand.vmem [shape: bf16[320,256], index: 5, kind: input, shape index: {}]   ;;  %s6446_s7 = inlined_call_operand.vmem [shape: bf16[256,128], index: 7, kind: input, shape index: {}]   ;;  %s6447_s4 = inlined_call_operand.vmem [shape: f32[1,320], index: 4, kind: input, shape index: {}]   ;;  %s6448_s9 = inlined_call_operand.vmem [shape: bf16[128,128], index: 9, kind: input, shape index: {}]   ;;  %s6449_s6 = inlined_call_operand.vmem [shape: f32[1,256], index: 6, kind: input, shape index: {}]   ;;  %s6450_s8 = inlined_call_operand.vmem [shape: f32[1,128], index: 8, kind: input, shape index: {}]   ;;  %s6451_s10 = inlined_call_operand.vmem [shape: f32[1,128], index: 10, kind: input, shape index: {}]   ;;  %s6452_s11 = inlined_call_operand.vmem [shape: f32[16,128], index: 11, kind: output, shape index: {}]  }
   0x1   :  { %v4447_v0 = vld [vmem:[%s6441_s1 + $0x4] ss:$20 sps:$4 sm:$0xff]   ;;  %v4449_v1 = vld [vmem:[%s6441_s1 + $0xc] ss:$20 sps:$4 sm:$0xff]   ;;  %v4452_v3 = vld [vmem:[%s6441_s1 + $0x8] ss:$20 sps:$4 sm:$0xff]  }
   0x2   :  { %1681 = vmatprep.subr.bf16.mxu0 %v4447_v0  ;;  %v4451_v2 = vld [vmem:[%s6441_s1] ss:$20 sps:$4 sm:$0xff]   ;;  %1853 = vmatprep.subr.bf16.mxu1 %v4449_v1  ;;  %v4457_v6 = vld [vmem:[%s6441_s1 + $0x28] ss:$20 sps:$4 sm:$0xff]   ;;  %v4458_v7 = vld [vmem:[%s6441_s1 + $0x30] ss:$20 sps:$4 sm:$0xff]  }
   0x3   :  { %v4453_v4 = vld [vmem:[%s6441_s1 + $0x2c] ss:$20 sps:$4 sm:$0xff]   ;;  %1682 = vmatpush1.bf16.msra.mxu0 %v4451_v2  ;;  %1854 = vmatpush1.bf16.msra.mxu1 %v4452_v3  ;;  %v4455_v5 = vld [vmem:[%s6441_s1 + $0x34] ss:$20 sps:$4 sm:$0xff]   ;;  %v4461_v9 = vld [vmem:[%s6441_s1 + $0x5c] ss:$20 sps:$4 sm:$0xff]  }
   0x4   :  { %1683 = vmatprep.subr.bf16.mxu0 %v4453_v4  ;;  %1855 = vmatprep.subr.bf16.mxu1 %v4455_v5  ;;  %v4459_v8 = vld [vmem:[%s6441_s1 + $0x54] ss:$20 sps:$4 sm:$0xff]   ;;  %v4463_v10 = vld [vmem:[%s6441_s1 + $0x50] ss:$20 sps:$4 sm:$0xff]   ;;  %v4464_v11 = vld [vmem:[%s6441_s1 + $0x58] ss:$20 sps:$4 sm:$0xff]  }
   0x5   :  { %v4465_v12 = vld [vmem:[%s6441_s1 + $0x7c] ss:$20 sps:$4 sm:$0xff]   ;;  %v4467_v13 = vld [vmem:[%s6441_s1 + $0x84] ss:$20 sps:$4 sm:$0xff]   ;;  %v4470_v15 = vld [vmem:[%s6441_s1 + $0x80] ss:$20 sps:$4 sm:$0xff]  }
   0x6   :  { %v4469_v14 = vld [vmem:[%s6441_s1 + $0x78] ss:$20 sps:$4 sm:$0xff]   ;;  %v4475_v18 = vld [vmem:[%s6441_s1 + $0xa0] ss:$20 sps:$4 sm:$0xff]   ;;  %v4476_v19 = vld [vmem:[%s6441_s1 + $0xa8] ss:$20 sps:$4 sm:$0xff]  }
   0x7   :  { %1684 = vmatpush1.bf16.msra.mxu0 %v4457_v6  ;;  %1856 = vmatpush1.bf16.msra.mxu1 %v4458_v7  ;;  %v4471_v16 = vld [vmem:[%s6441_s1 + $0xa4] ss:$20 sps:$4 sm:$0xff]   ;;  %v4473_v17 = vld [vmem:[%s6441_s1 + $0xac] ss:$20 sps:$4 sm:$0xff]   ;;  %v4479_v21 = vld [vmem:[%s6441_s1 + $0xd4] ss:$20 sps:$4 sm:$0xff]  }
   0x8   :  { %1685 = vmatprep.subr.bf16.mxu0 %v4459_v8  ;;  %1857 = vmatprep.subr.bf16.mxu1 %v4461_v9  ;;  %v4477_v20 = vld [vmem:[%s6441_s1 + $0xcc] ss:$20 sps:$4 sm:$0xff]   ;;  %v4481_v22 = vld [vmem:[%s6441_s1 + $0xc8] ss:$20 sps:$4 sm:$0xff]   ;;  %v4482_v23 = vld [vmem:[%s6441_s1 + $0xd0] ss:$20 sps:$4 sm:$0xff]  }
   0x9   :  { %v4483_v24 = vld [vmem:[%s6441_s1 + $0xf4] ss:$20 sps:$4 sm:$0xff]   ;;  %v4485_v25 = vld [vmem:[%s6441_s1 + $0xfc] ss:$20 sps:$4 sm:$0xff]   ;;  %v4488_v27 = vld [vmem:[%s6441_s1 + $0xf8] ss:$20 sps:$4 sm:$0xff]  }
   0xa   :  { %v4487_v26 = vld [vmem:[%s6441_s1 + $0xf0] ss:$20 sps:$4 sm:$0xff]   ;;  %v4493_v30 = vld [vmem:[%s6441_s1 + $0x118] ss:$20 sps:$4 sm:$0xff]   ;;  %v4494_v31 = vld [vmem:[%s6441_s1 + $0x120] ss:$20 sps:$4 sm:$0xff]  }
   0xb   :  { %1686 = vmatpush1.bf16.msra.mxu0 %v4463_v10  ;;  %1858 = vmatpush1.bf16.msra.mxu1 %v4464_v11  ;;  %v4489_v28 = vld [vmem:[%s6441_s1 + $0x11c] ss:$20 sps:$4 sm:$0xff]   ;;  %v4491_v29 = vld [vmem:[%s6441_s1 + $0x124] ss:$20 sps:$4 sm:$0xff]   ;;  %v4497_v33 = vld [vmem:[%s6441_s1 + $0x14c] ss:$20 sps:$4 sm:$0xff]  }
   0xc   :  { %1687 = vmatprep.subr.bf16.mxu0 %v4465_v12  ;;  %1859 = vmatprep.subr.bf16.mxu1 %v4467_v13  ;;  %v4495_v32 = vld [vmem:[%s6441_s1 + $0x144] ss:$20 sps:$4 sm:$0xff]   ;;  %v4499_v34 = vld [vmem:[%s6441_s1 + $0x140] ss:$20 sps:$4 sm:$0xff]   ;;  %v4500_v35 = vld [vmem:[%s6441_s1 + $0x148] ss:$20 sps:$4 sm:$0xff]  }
   0xd   :  { %v4501_v36 = vld [vmem:[%s6441_s1 + $0x16c] ss:$20 sps:$4 sm:$0xff]   ;;  %v4503_v37 = vld [vmem:[%s6441_s1 + $0x174] ss:$20 sps:$4 sm:$0xff]   ;;  %v4506_v39 = vld [vmem:[%s6441_s1 + $0x170] ss:$20 sps:$4 sm:$0xff]  }
   0xe   :  { %v4505_v38 = vld [vmem:[%s6441_s1 + $0x168] ss:$20 sps:$4 sm:$0xff]   ;;  %v4511_v42 = vld [vmem:[%s6441_s1 + $0x190] ss:$20 sps:$4 sm:$0xff]   ;;  %v4512_v43 = vld [vmem:[%s6441_s1 + $0x198] ss:$20 sps:$4 sm:$0xff]  }
   0xf   :  { %1688 = vmatpush1.bf16.msra.mxu0 %v4469_v14  ;;  %1860 = vmatpush1.bf16.msra.mxu1 %v4470_v15  ;;  %v4507_v40 = vld [vmem:[%s6441_s1 + $0x194] ss:$20 sps:$4 sm:$0xff]   ;;  %v4509_v41 = vld [vmem:[%s6441_s1 + $0x19c] ss:$20 sps:$4 sm:$0xff]   ;;  %v4515_v45 = vld [vmem:[%s6441_s1 + $0x1c4] ss:$20 sps:$4 sm:$0xff]  }
  0x10   :  { %1689 = vmatprep.subr.bf16.mxu0 %v4471_v16  ;;  %1861 = vmatprep.subr.bf16.mxu1 %v4473_v17  ;;  %v4513_v44 = vld [vmem:[%s6441_s1 + $0x1bc] ss:$20 sps:$4 sm:$0xff]   ;;  %v4517_v46 = vld [vmem:[%s6441_s1 + $0x1b8] ss:$20 sps:$4 sm:$0xff]   ;;  %v4543_v47 = vld [vmem:[%s6442_s0 + $0x4] ss:$28 sps:$4 sm:$0xff]  }
  0x11   :  { %v4518_v48 = vld [vmem:[%s6441_s1 + $0x1c0] ss:$20 sps:$4 sm:$0xff]   ;;  %v4519_v49 = vld [vmem:[%s6441_s1 + $0x1e4] ss:$20 sps:$4 sm:$0xff]   ;;  %1713 = vmatprep.mubr.bf16.mxu0 %v4543_v47  ;;  %1885 = vmatprep.mubr.bf16.mxu1 %v4543_v47  ;;  %v4524_v52 = vld [vmem:[%s6441_s1 + $0x1e8] ss:$20 sps:$4 sm:$0xff]  }
  0x12   :  { %v4521_v50 = vld [vmem:[%s6441_s1 + $0x1ec] ss:$20 sps:$4 sm:$0xff]   ;;  %v4527_v54 = vld [vmem:[%s6441_s1 + $0x214] ss:$20 sps:$4 sm:$0xff]   ;;  %v4530_v56 = vld [vmem:[%s6441_s1 + $0x210] ss:$20 sps:$4 sm:$0xff]  }
  0x13   :  { %1690 = vmatpush1.bf16.msra.mxu0 %v4475_v18  ;;  %1862 = vmatpush1.bf16.msra.mxu1 %v4476_v19  ;;  %v4523_v51 = vld [vmem:[%s6441_s1 + $0x1e0] ss:$20 sps:$4 sm:$0xff]   ;;  %v4529_v55 = vld [vmem:[%s6441_s1 + $0x208] ss:$20 sps:$4 sm:$0xff]   ;;  %v4535_v59 = vld [vmem:[%s6441_s1 + $0x230] ss:$20 sps:$4 sm:$0xff]  }
  0x14   :  { %1691 = vmatprep.subr.bf16.mxu0 %v4477_v20  ;;  %1863 = vmatprep.subr.bf16.mxu1 %v4479_v21  ;;  %v4525_v53 = vld [vmem:[%s6441_s1 + $0x20c] ss:$20 sps:$4 sm:$0xff]   ;;  %v4531_v57 = vld [vmem:[%s6441_s1 + $0x234] ss:$20 sps:$4 sm:$0xff]   ;;  %v4533_v58 = vld [vmem:[%s6441_s1 + $0x23c] ss:$20 sps:$4 sm:$0xff]  }
  0x15   :  { %v4536_v60 = vld [vmem:[%s6441_s1 + $0x238] ss:$20 sps:$4 sm:$0xff]   ;;  %v4537_v61 = vld [vmem:[%s6441_s1 + $0x25c] ss:$20 sps:$4 sm:$0xff]   ;;  %v4542_v0 = vld [vmem:[%s6441_s1 + $0x260] ss:$20 sps:$4 sm:$0xff]  }
  0x16   :  { %v4539_v62 = vld [vmem:[%s6441_s1 + $0x264] ss:$20 sps:$4 sm:$0xff]   ;;  %v4550_v2 = vld [vmem:[%s6441_s1 + $0x28c] ss:$20 sps:$4 sm:$0xff]   ;;  %v4548_v4 = vld [vmem:[%s6441_s1 + $0x288] ss:$20 sps:$4 sm:$0xff]  }
  0x17   :  { %1692 = vmatpush1.bf16.msra.mxu0 %v4481_v22  ;;  %1864 = vmatpush1.bf16.msra.mxu1 %v4482_v23  ;;  %v4541_v63 = vld [vmem:[%s6441_s1 + $0x258] ss:$20 sps:$4 sm:$0xff]   ;;  %v4545_v3 = vld [vmem:[%s6441_s1 + $0x280] ss:$20 sps:$4 sm:$0xff]   ;;  %v4552_v8 = vld [vmem:[%s6441_s1 + $0x2a8] ss:$20 sps:$4 sm:$0xff]  }
  0x18   :  { %1693 = vmatprep.subr.bf16.mxu0 %v4483_v24  ;;  %1865 = vmatprep.subr.bf16.mxu1 %v4485_v25  ;;  %v4547_v1 = vld [vmem:[%s6441_s1 + $0x284] ss:$20 sps:$4 sm:$0xff]   ;;  %v4551_v5 = vld [vmem:[%s6442_s0] ss:$28 sps:$4 sm:$0xff]   ;;  %v4557_v7 = vld [vmem:[%s6441_s1 + $0x2b4] ss:$20 sps:$4 sm:$0xff]  }
  0x19   :  { %v4554_v6 = vld [vmem:[%s6441_s1 + $0x2ac] ss:$20 sps:$4 sm:$0xff]   ;;  %v4555_v9 = vld [vmem:[%s6441_s1 + $0x2b0] ss:$20 sps:$4 sm:$0xff]   ;;  %v4560_v10 = vld [vmem:[%s6441_s1 + $0x2d4] ss:$20 sps:$4 sm:$0xff]  }
  0x1a   :  { %v4563_v11 = vld [vmem:[%s6441_s1 + $0x2dc] ss:$20 sps:$4 sm:$0xff]   ;;  %v4561_v13 = vld [vmem:[%s6441_s1 + $0x2d8] ss:$20 sps:$4 sm:$0xff]   ;;  %v4567_v17 = vld [vmem:[%s6441_s1 + $0x300] ss:$20 sps:$4 sm:$0xff]  }
  0x1b   :  { %1694 = vmatpush1.bf16.msra.mxu0 %v4487_v26  ;;  %1866 = vmatpush1.bf16.msra.mxu1 %v4488_v27  ;;  %v4558_v12 = vld [vmem:[%s6441_s1 + $0x2d0] ss:$20 sps:$4 sm:$0xff]   ;;  %v4564_v16 = vld [vmem:[%s6441_s1 + $0x2f8] ss:$20 sps:$4 sm:$0xff]   ;;  %v4570_v20 = vld [vmem:[%s6441_s1 + $0x320] ss:$20 sps:$4 sm:$0xff]  }
  0x1c   :  { %1695 = vmatprep.subr.bf16.mxu0 %v4489_v28  ;;  %1867 = vmatprep.subr.bf16.mxu1 %v4491_v29  ;;  %v4566_v14 = vld [vmem:[%s6441_s1 + $0x2fc] ss:$20 sps:$4 sm:$0xff]   ;;  %v4569_v15 = vld [vmem:[%s6441_s1 + $0x304] ss:$20 sps:$4 sm:$0xff]   ;;  %v4575_v19 = vld [vmem:[%s6441_s1 + $0x32c] ss:$20 sps:$4 sm:$0xff]  }
  0x1d   :  { %v4572_v18 = vld [vmem:[%s6441_s1 + $0x324] ss:$20 sps:$4 sm:$0xff]   ;;  %v4573_v21 = vld [vmem:[%s6441_s1 + $0x328] ss:$20 sps:$4 sm:$0xff]   ;;  %v4578_v22 = vld [vmem:[%s6441_s1 + $0x34c] ss:$20 sps:$4 sm:$0xff]  }
  0x1e   :  { %v4581_v23 = vld [vmem:[%s6441_s1 + $0x354] ss:$20 sps:$4 sm:$0xff]   ;;  %v4579_v25 = vld [vmem:[%s6441_s1 + $0x350] ss:$20 sps:$4 sm:$0xff]   ;;  %v4585_v29 = vld [vmem:[%s6441_s1 + $0x378] ss:$20 sps:$4 sm:$0xff]  }
  0x1f   :  { %1696 = vmatpush1.bf16.msra.mxu0 %v4493_v30  ;;  %1868 = vmatpush1.bf16.msra.mxu1 %v4494_v31  ;;  %v4576_v24 = vld [vmem:[%s6441_s1 + $0x348] ss:$20 sps:$4 sm:$0xff]   ;;  %v4582_v28 = vld [vmem:[%s6441_s1 + $0x370] ss:$20 sps:$4 sm:$0xff]   ;;  %vm3398_vm4 = vcmask 523264  }
  0x20   :  { %1697 = vmatprep.subr.bf16.mxu0 %v4495_v32  ;;  %1869 = vmatprep.subr.bf16.mxu1 %v4497_v33  ;;  %v4584_v26 = vld [vmem:[%s6441_s1 + $0x374] ss:$20 sps:$4 sm:$0xff]   ;;  %v4587_v27 = vld [vmem:[%s6441_s1 + $0x37c] ss:$20 sps:$4 sm:$0xff]   ;;  %v4593_v32 = vld [vmem:[%s6441_s1 + $0x3a4] ss:$20 sps:$4 sm:$0xff]  }
  0x21   :  { %v5365_v30 = vld [vmem:[%s6442_s0 + $0xc] ss:$28 sps:$4 sm:$0xff]   ;;  %v4590_v31 = vld [vmem:[%s6441_s1 + $0x39c] ss:$20 sps:$4 sm:$0xff]  }
  0x22   :  { %v4588_v33 = vld [vmem:[%s6441_s1 + $0x398] ss:$20 sps:$4 sm:$0xff]   ;;  %v4614_v47 = vld [vmem:[%s6441_s1 + $0x43c] ss:$20 sps:$4 sm:$0xff]  }
  0x23   :  { %1698 = vmatpush1.bf16.msra.mxu0 %v4499_v34  ;;  %1870 = vmatpush1.bf16.msra.mxu1 %v4500_v35  ;;  %v4591_v34 = vld [vmem:[%s6441_s1 + $0x3a0] ss:$20 sps:$4 sm:$0xff]   ;;  %v4596_v35 = vld [vmem:[%s6441_s1 + $0x3c4] ss:$20 sps:$4 sm:$0xff]  }
  0x24   :  { %1699 = vmatprep.subr.bf16.mxu0 %v4501_v36  ;;  %1871 = vmatprep.subr.bf16.mxu1 %v4503_v37  ;;  %v4599_v36 = vld [vmem:[%s6441_s1 + $0x3cc] ss:$20 sps:$4 sm:$0xff]  }
  0x25   :  { %v4594_v37 = vld [vmem:[%s6441_s1 + $0x3c0] ss:$20 sps:$4 sm:$0xff]  }
  0x27   :  { %1700 = vmatpush1.bf16.msra.mxu0 %v4505_v38  ;;  %1872 = vmatpush1.bf16.msra.mxu1 %v4506_v39  ;;  %v4597_v38 = vld [vmem:[%s6441_s1 + $0x3c8] ss:$20 sps:$4 sm:$0xff]   ;;  %v4602_v39 = vld [vmem:[%s6441_s1 + $0x3ec] ss:$20 sps:$4 sm:$0xff]  }
  0x28   :  { %1701 = vmatprep.subr.bf16.mxu0 %v4507_v40  ;;  %1873 = vmatprep.subr.bf16.mxu1 %v4509_v41  ;;  %v4605_v40 = vld [vmem:[%s6441_s1 + $0x3f4] ss:$20 sps:$4 sm:$0xff]  }
  0x29   :  { %v4600_v41 = vld [vmem:[%s6441_s1 + $0x3e8] ss:$20 sps:$4 sm:$0xff]  }
  0x2b   :  { %1702 = vmatpush1.bf16.msra.mxu0 %v4511_v42  ;;  %1874 = vmatpush1.bf16.msra.mxu1 %v4512_v43  ;;  %v4603_v42 = vld [vmem:[%s6441_s1 + $0x3f0] ss:$20 sps:$4 sm:$0xff]   ;;  %v4608_v43 = vld [vmem:[%s6441_s1 + $0x414] ss:$20 sps:$4 sm:$0xff]  }
  0x2c   :  { %1703 = vmatprep.subr.bf16.mxu0 %v4513_v44  ;;  %1875 = vmatprep.subr.bf16.mxu1 %v4515_v45  ;;  %v4611_v44 = vld [vmem:[%s6441_s1 + $0x41c] ss:$20 sps:$4 sm:$0xff]  }
  0x2d   :  { %v4606_v45 = vld [vmem:[%s6441_s1 + $0x410] ss:$20 sps:$4 sm:$0xff]  }
  0x2f   :  { %1704 = vmatpush1.bf16.msra.mxu0 %v4517_v46  ;;  %1876 = vmatpush1.bf16.msra.mxu1 %v4518_v48  ;;  %v4609_v46 = vld [vmem:[%s6441_s1 + $0x418] ss:$20 sps:$4 sm:$0xff]  }
  0x30   :  { %1705 = vmatprep.subr.bf16.mxu0 %v4519_v49  ;;  %1877 = vmatprep.subr.bf16.mxu1 %v4521_v50  ;;  %v4617_v48 = vld [vmem:[%s6441_s1 + $0x444] ss:$20 sps:$4 sm:$0xff]   ;;  %v4615_v50 = vld [vmem:[%s6441_s1 + $0x440] ss:$20 sps:$4 sm:$0xff]  }
  0x31   :  { %v4612_v49 = vld [vmem:[%s6441_s1 + $0x438] ss:$20 sps:$4 sm:$0xff]  }
  0x33   :  { %1706 = vmatpush1.bf16.msra.mxu0 %v4523_v51  ;;  %1878 = vmatpush1.bf16.msra.mxu1 %v4524_v52  ;;  %v4620_v51 = vld [vmem:[%s6441_s1 + $0x464] ss:$20 sps:$4 sm:$0xff]   ;;  %v4623_v52 = vld [vmem:[%s6441_s1 + $0x46c] ss:$20 sps:$4 sm:$0xff]  }
  0x34   :  { %1707 = vmatprep.subr.bf16.mxu0 %v4525_v53  ;;  %1879 = vmatprep.subr.bf16.mxu1 %v4527_v54  ;;  %v4618_v53 = vld [vmem:[%s6441_s1 + $0x460] ss:$20 sps:$4 sm:$0xff]   ;;  %v4621_v54 = vld [vmem:[%s6441_s1 + $0x468] ss:$20 sps:$4 sm:$0xff]  }
  0x37   :  { %1708 = vmatpush1.bf16.msra.mxu0 %v4529_v55  ;;  %1880 = vmatpush1.bf16.msra.mxu1 %v4530_v56  ;;  %v4626_v55 = vld [vmem:[%s6441_s1 + $0x48c] ss:$20 sps:$4 sm:$0xff]   ;;  %v4629_v56 = vld [vmem:[%s6441_s1 + $0x494] ss:$20 sps:$4 sm:$0xff]  }
  0x38   :  { %1709 = vmatprep.subr.bf16.mxu0 %v4531_v57  ;;  %1881 = vmatprep.subr.bf16.mxu1 %v4533_v58  ;;  %v4624_v57 = vld [vmem:[%s6441_s1 + $0x488] ss:$20 sps:$4 sm:$0xff]   ;;  %v4627_v58 = vld [vmem:[%s6441_s1 + $0x490] ss:$20 sps:$4 sm:$0xff]  }
  0x3b   :  { %1710 = vmatpush1.bf16.msra.mxu0 %v4535_v59  ;;  %1882 = vmatpush1.bf16.msra.mxu1 %v4536_v60  ;;  %v4632_v59 = vld [vmem:[%s6441_s1 + $0x4b4] ss:$20 sps:$4 sm:$0xff]   ;;  %v4635_v60 = vld [vmem:[%s6441_s1 + $0x4bc] ss:$20 sps:$4 sm:$0xff]  }
  0x3c   :  { %1711 = vmatprep.subr.bf16.mxu0 %v4537_v61  ;;  %1883 = vmatprep.subr.bf16.mxu1 %v4539_v62  ;;  %v4630_v61 = vld [vmem:[%s6441_s1 + $0x4b0] ss:$20 sps:$4 sm:$0xff]   ;;  %v4633_v62 = vld [vmem:[%s6441_s1 + $0x4b8] ss:$20 sps:$4 sm:$0xff]  }
  0x3f   :  { %1712 = vmatpush1.bf16.msra.mxu0 %v4541_v63  ;;  %1884 = vmatpush1.bf16.msra.mxu1 %v4542_v0  ;;  %v4638_v63 = vld [vmem:[%s6441_s1 + $0x4dc] ss:$20 sps:$4 sm:$0xff]   ;;  %v4641_v0 = vld [vmem:[%s6441_s1 + $0x4e4] ss:$20 sps:$4 sm:$0xff]  }
  0x40   :  { %1724 = vmatprep.subr.bf16.mxu0 %v4547_v1  ;;  %1896 = vmatprep.subr.bf16.mxu1 %v4550_v2  ;;  %v4636_v1 = vld [vmem:[%s6441_s1 + $0x4d8] ss:$20 sps:$4 sm:$0xff]   ;;  %v4639_v2 = vld [vmem:[%s6441_s1 + $0x4e0] ss:$20 sps:$4 sm:$0xff]  }
  0x42   :  { %1714 = vmatmul.mubr.bf16.vlgmr.msra.gmra.mrb[0].mxu0 %v4551_v5  ;;  %1886 = vmatmul.mubr.bf16.vlgmr.msra.gmra.mrb[0].mxu1 %v4551_v5  ;;  %v5486_v5 = vld [vmem:[%s6442_s0 + $0x8] ss:$28 sps:$4 sm:$0xff]  }
  0x43   :  { %1725 = vmatpush1.bf16.msra.mxu0 %v4545_v3  ;;  %1897 = vmatpush1.bf16.msra.mxu1 %v4548_v4  ;;  %v4647_v3 = vld [vmem:[%s6441_s1 + $0x504] ss:$20 sps:$4 sm:$0xff]   ;;  %v4650_v4 = vld [vmem:[%s6441_s1 + $0x50c] ss:$20 sps:$4 sm:$0xff]  }
  0x44   :  { %1726 = vmatprep.subr.bf16.mxu0 %v4554_v6  ;;  %1898 = vmatprep.subr.bf16.mxu1 %v4557_v7  ;;  %v4645_v6 = vld [vmem:[%s6441_s1 + $0x500] ss:$20 sps:$4 sm:$0xff]   ;;  %v4648_v7 = vld [vmem:[%s6441_s1 + $0x508] ss:$20 sps:$4 sm:$0xff]  }
  0x45   :  { %1756 = vmatprep.mubr.bf16.mxu0 %v5365_v30  ;;  %1928 = vmatprep.mubr.bf16.mxu1 %v5365_v30 }
  0x47   :  { %1727 = vmatpush1.bf16.msra.mxu0 %v4552_v8  ;;  %1899 = vmatpush1.bf16.msra.mxu1 %v4555_v9  ;;  %v4653_v8 = vld [vmem:[%s6441_s1 + $0x52c] ss:$20 sps:$4 sm:$0xff]   ;;  %v4656_v9 = vld [vmem:[%s6441_s1 + $0x534] ss:$20 sps:$4 sm:$0xff]  }
  0x48   :  { %1728 = vmatprep.subr.bf16.mxu0 %v4560_v10  ;;  %1900 = vmatprep.subr.bf16.mxu1 %v4563_v11  ;;  %v4651_v10 = vld [vmem:[%s6441_s1 + $0x528] ss:$20 sps:$4 sm:$0xff]   ;;  %v4654_v11 = vld [vmem:[%s6441_s1 + $0x530] ss:$20 sps:$4 sm:$0xff]  }
  0x4b   :  { %1729 = vmatpush1.bf16.msra.mxu0 %v4558_v12  ;;  %1901 = vmatpush1.bf16.msra.mxu1 %v4561_v13  ;;  %v5511_v12 = vld [vmem:[%s6442_s0 + $0x14] ss:$28 sps:$4 sm:$0xff]  }
  0x4c   :  { %1730 = vmatprep.subr.bf16.mxu0 %v4566_v14  ;;  %1902 = vmatprep.subr.bf16.mxu1 %v4569_v15  ;;  %v4659_v13 = vld [vmem:[%s6441_s1 + $0x554] ss:$20 sps:$4 sm:$0xff]   ;;  %v4662_v14 = vld [vmem:[%s6441_s1 + $0x55c] ss:$20 sps:$4 sm:$0xff]  }
  0x4d   :  { %v4657_v15 = vld [vmem:[%s6441_s1 + $0x550] ss:$20 sps:$4 sm:$0xff]  }
  0x4f   :  { %1731 = vmatpush1.bf16.msra.mxu0 %v4564_v16  ;;  %1903 = vmatpush1.bf16.msra.mxu1 %v4567_v17  ;;  %v4660_v16 = vld [vmem:[%s6441_s1 + $0x558] ss:$20 sps:$4 sm:$0xff]   ;;  %v4665_v17 = vld [vmem:[%s6441_s1 + $0x57c] ss:$20 sps:$4 sm:$0xff]  }
  0x50   :  { %1732 = vmatprep.subr.bf16.mxu0 %v4572_v18  ;;  %1904 = vmatprep.subr.bf16.mxu1 %v4575_v19  ;;  %v4668_v18 = vld [vmem:[%s6441_s1 + $0x584] ss:$20 sps:$4 sm:$0xff]  }
  0x51   :  { %v4663_v19 = vld [vmem:[%s6441_s1 + $0x578] ss:$20 sps:$4 sm:$0xff]  }
  0x53   :  { %1733 = vmatpush1.bf16.msra.mxu0 %v4570_v20  ;;  %1905 = vmatpush1.bf16.msra.mxu1 %v4573_v21  ;;  %v4666_v20 = vld [vmem:[%s6441_s1 + $0x580] ss:$20 sps:$4 sm:$0xff]   ;;  %v4671_v21 = vld [vmem:[%s6441_s1 + $0x5a4] ss:$20 sps:$4 sm:$0xff]  }
  0x54   :  { %1734 = vmatprep.subr.bf16.mxu0 %v4578_v22  ;;  %1906 = vmatprep.subr.bf16.mxu1 %v4581_v23  ;;  %v4674_v22 = vld [vmem:[%s6441_s1 + $0x5ac] ss:$20 sps:$4 sm:$0xff]  }
  0x55   :  { %v4669_v23 = vld [vmem:[%s6441_s1 + $0x5a0] ss:$20 sps:$4 sm:$0xff]  }
  0x57   :  { %1735 = vmatpush1.bf16.msra.mxu0 %v4576_v24  ;;  %1907 = vmatpush1.bf16.msra.mxu1 %v4579_v25  ;;  %v4672_v24 = vld [vmem:[%s6441_s1 + $0x5a8] ss:$20 sps:$4 sm:$0xff]   ;;  %v4677_v25 = vld [vmem:[%s6441_s1 + $0x5cc] ss:$20 sps:$4 sm:$0xff]  }
  0x58   :  { %1736 = vmatprep.subr.bf16.mxu0 %v4584_v26  ;;  %1908 = vmatprep.subr.bf16.mxu1 %v4587_v27  ;;  %v4680_v26 = vld [vmem:[%s6441_s1 + $0x5d4] ss:$20 sps:$4 sm:$0xff]  }
  0x59   :  { %v4675_v27 = vld [vmem:[%s6441_s1 + $0x5c8] ss:$20 sps:$4 sm:$0xff]  }
  0x5b   :  { %1737 = vmatpush1.bf16.msra.mxu0 %v4582_v28  ;;  %1909 = vmatpush1.bf16.msra.mxu1 %v4585_v29  ;;  %v4678_v28 = vld [vmem:[%s6441_s1 + $0x5d0] ss:$20 sps:$4 sm:$0xff]   ;;  %v4683_v29 = vld [vmem:[%s6441_s1 + $0x5f4] ss:$20 sps:$4 sm:$0xff]  }
  0x5c   :  { %1738 = vmatprep.subr.bf16.mxu0 %v4590_v31  ;;  %1910 = vmatprep.subr.bf16.mxu1 %v4593_v32  ;;  %v4686_v31 = vld [vmem:[%s6441_s1 + $0x5fc] ss:$20 sps:$4 sm:$0xff]  }
  0x5d   :  { %v4681_v32 = vld [vmem:[%s6441_s1 + $0x5f0] ss:$20 sps:$4 sm:$0xff]  }
  0x5f   :  { %1739 = vmatpush1.bf16.msra.mxu0 %v4588_v33  ;;  %1911 = vmatpush1.bf16.msra.mxu1 %v4591_v34  ;;  %v4684_v33 = vld [vmem:[%s6441_s1 + $0x5f8] ss:$20 sps:$4 sm:$0xff]   ;;  %v4689_v34 = vld [vmem:[%s6441_s1 + $0x61c] ss:$20 sps:$4 sm:$0xff]  }
  0x60   :  { %1740 = vmatprep.subr.bf16.mxu0 %v4596_v35  ;;  %1912 = vmatprep.subr.bf16.mxu1 %v4599_v36  ;;  %v4692_v35 = vld [vmem:[%s6441_s1 + $0x624] ss:$20 sps:$4 sm:$0xff]  }
  0x61   :  { %v4687_v36 = vld [vmem:[%s6441_s1 + $0x618] ss:$20 sps:$4 sm:$0xff]  }
  0x63   :  { %1741 = vmatpush1.bf16.msra.mxu0 %v4594_v37  ;;  %1913 = vmatpush1.bf16.msra.mxu1 %v4597_v38  ;;  %v4690_v37 = vld [vmem:[%s6441_s1 + $0x620] ss:$20 sps:$4 sm:$0xff]   ;;  %v4695_v38 = vld [vmem:[%s6441_s1 + $0x644] ss:$20 sps:$4 sm:$0xff]  }
  0x64   :  { %1742 = vmatprep.subr.bf16.mxu0 %v4602_v39  ;;  %1914 = vmatprep.subr.bf16.mxu1 %v4605_v40  ;;  %v4698_v39 = vld [vmem:[%s6441_s1 + $0x64c] ss:$20 sps:$4 sm:$0xff]  }
  0x65   :  { %v4693_v40 = vld [vmem:[%s6441_s1 + $0x640] ss:$20 sps:$4 sm:$0xff]  }
  0x67   :  { %1743 = vmatpush1.bf16.msra.mxu0 %v4600_v41  ;;  %1915 = vmatpush1.bf16.msra.mxu1 %v4603_v42  ;;  %v4696_v41 = vld [vmem:[%s6441_s1 + $0x648] ss:$20 sps:$4 sm:$0xff]   ;;  %v4701_v42 = vld [vmem:[%s6441_s1 + $0x66c] ss:$20 sps:$4 sm:$0xff]  }
  0x68   :  { %1744 = vmatprep.subr.bf16.mxu0 %v4608_v43  ;;  %1916 = vmatprep.subr.bf16.mxu1 %v4611_v44  ;;  %v4704_v43 = vld [vmem:[%s6441_s1 + $0x674] ss:$20 sps:$4 sm:$0xff]  }
  0x69   :  { %v4699_v44 = vld [vmem:[%s6441_s1 + $0x668] ss:$20 sps:$4 sm:$0xff]  }
  0x6b   :  { %1745 = vmatpush1.bf16.msra.mxu0 %v4606_v45  ;;  %1917 = vmatpush1.bf16.msra.mxu1 %v4609_v46  ;;  %v4702_v45 = vld [vmem:[%s6441_s1 + $0x670] ss:$20 sps:$4 sm:$0xff]   ;;  %v4707_v46 = vld [vmem:[%s6441_s1 + $0x694] ss:$20 sps:$4 sm:$0xff]  }
  0x6c   :  { %1746 = vmatprep.subr.bf16.mxu0 %v4614_v47  ;;  %1918 = vmatprep.subr.bf16.mxu1 %v4617_v48  ;;  %v4710_v47 = vld [vmem:[%s6441_s1 + $0x69c] ss:$20 sps:$4 sm:$0xff]  }
  0x6d   :  { %v4705_v48 = vld [vmem:[%s6441_s1 + $0x690] ss:$20 sps:$4 sm:$0xff]  }
  0x6f   :  { %1747 = vmatpush1.bf16.msra.mxu0 %v4612_v49  ;;  %1919 = vmatpush1.bf16.msra.mxu1 %v4615_v50  ;;  %v4708_v49 = vld [vmem:[%s6441_s1 + $0x698] ss:$20 sps:$4 sm:$0xff]   ;;  %v4713_v50 = vld [vmem:[%s6441_s1 + $0x6bc] ss:$20 sps:$4 sm:$0xff]  }
  0x70   :  { %1748 = vmatprep.subr.bf16.mxu0 %v4620_v51  ;;  %1920 = vmatprep.subr.bf16.mxu1 %v4623_v52  ;;  %v4716_v51 = vld [vmem:[%s6441_s1 + $0x6c4] ss:$20 sps:$4 sm:$0xff]  }
  0x71   :  { %v4711_v52 = vld [vmem:[%s6441_s1 + $0x6b8] ss:$20 sps:$4 sm:$0xff]  }
  0x73   :  { %1749 = vmatpush1.bf16.msra.mxu0 %v4618_v53  ;;  %1921 = vmatpush1.bf16.msra.mxu1 %v4621_v54  ;;  %v4714_v53 = vld [vmem:[%s6441_s1 + $0x6c0] ss:$20 sps:$4 sm:$0xff]   ;;  %v4719_v54 = vld [vmem:[%s6441_s1 + $0x6e4] ss:$20 sps:$4 sm:$0xff]  }
  0x74   :  { %1750 = vmatprep.subr.bf16.mxu0 %v4626_v55  ;;  %1922 = vmatprep.subr.bf16.mxu1 %v4629_v56  ;;  %v4722_v55 = vld [vmem:[%s6441_s1 + $0x6ec] ss:$20 sps:$4 sm:$0xff]  }
  0x75   :  { %v4717_v56 = vld [vmem:[%s6441_s1 + $0x6e0] ss:$20 sps:$4 sm:$0xff]  }
  0x77   :  { %1751 = vmatpush1.bf16.msra.mxu0 %v4624_v57  ;;  %1923 = vmatpush1.bf16.msra.mxu1 %v4627_v58  ;;  %v4720_v57 = vld [vmem:[%s6441_s1 + $0x6e8] ss:$20 sps:$4 sm:$0xff]   ;;  %v4725_v58 = vld [vmem:[%s6441_s1 + $0x70c] ss:$20 sps:$4 sm:$0xff]  }
  0x78   :  { %1752 = vmatprep.subr.bf16.mxu0 %v4632_v59  ;;  %1924 = vmatprep.subr.bf16.mxu1 %v4635_v60  ;;  %v4728_v59 = vld [vmem:[%s6441_s1 + $0x714] ss:$20 sps:$4 sm:$0xff]  }
  0x79   :  { %v4723_v60 = vld [vmem:[%s6441_s1 + $0x708] ss:$20 sps:$4 sm:$0xff]  }
  0x7b   :  { %1753 = vmatpush1.bf16.msra.mxu0 %v4630_v61  ;;  %1925 = vmatpush1.bf16.msra.mxu1 %v4633_v62  ;;  %v4726_v61 = vld [vmem:[%s6441_s1 + $0x710] ss:$20 sps:$4 sm:$0xff]   ;;  %v4731_v62 = vld [vmem:[%s6441_s1 + $0x734] ss:$20 sps:$4 sm:$0xff]  }
  0x7c   :  { %1754 = vmatprep.subr.bf16.mxu0 %v4638_v63  ;;  %1926 = vmatprep.subr.bf16.mxu1 %v4641_v0  ;;  %v4734_v63 = vld [vmem:[%s6441_s1 + $0x73c] ss:$20 sps:$4 sm:$0xff]  }
  0x7d   :  { %v4729_v0 = vld [vmem:[%s6441_s1 + $0x730] ss:$20 sps:$4 sm:$0xff]  }
  0x7f   :  { %1755 = vmatpush1.bf16.msra.mxu0 %v4636_v1  ;;  %1927 = vmatpush1.bf16.msra.mxu1 %v4639_v2  ;;  %v4732_v1 = vld [vmem:[%s6441_s1 + $0x738] ss:$20 sps:$4 sm:$0xff]   ;;  %v4737_v2 = vld [vmem:[%s6441_s1 + $0x75c] ss:$20 sps:$4 sm:$0xff]  }
  0x80   :  { %1767 = vmatprep.subr.bf16.mxu0 %v4647_v3  ;;  %1939 = vmatprep.subr.bf16.mxu1 %v4650_v4  ;;  %v4740_v3 = vld [vmem:[%s6441_s1 + $0x764] ss:$20 sps:$4 sm:$0xff]  }
  0x81   :  { %v4735_v4 = vld [vmem:[%s6441_s1 + $0x758] ss:$20 sps:$4 sm:$0xff]  }
  0x82   :  { %1757 = vmatmul.mubr.bf16.vlgmr.msra.gmra.mrb[0].mxu0 %v5486_v5  ;;  %1929 = vmatmul.mubr.bf16.vlgmr.msra.gmra.mrb[0].mxu1 %v5486_v5 }
  0x83   :  { %1768 = vmatpush1.bf16.msra.mxu0 %v4645_v6  ;;  %1940 = vmatpush1.bf16.msra.mxu1 %v4648_v7  ;;  %v4738_v6 = vld [vmem:[%s6441_s1 + $0x760] ss:$20 sps:$4 sm:$0xff]   ;;  %v4746_v7 = vld [vmem:[%s6441_s1 + $0x784] ss:$20 sps:$4 sm:$0xff]  }
  0x84   :  { %1769 = vmatprep.subr.bf16.mxu0 %v4653_v8  ;;  %1941 = vmatprep.subr.bf16.mxu1 %v4656_v9  ;;  %v4753_v8 = vld [vmem:[%s6441_s1 + $0x3d0] ss:$20 sps:$4 sm:$0xff]  }
  0x85   :  { %1799 = vmatprep.mubr.bf16.mxu0 %v5511_v12  ;;  %1971 = vmatprep.mubr.bf16.mxu1 %v5511_v12  ;;  %v5692_v9 = vld [vmem:[%s6442_s0 + $0x10] ss:$28 sps:$4 sm:$0xff]  }
  0x87   :  { %1770 = vmatpush1.bf16.msra.mxu0 %v4651_v10  ;;  %1942 = vmatpush1.bf16.msra.mxu1 %v4654_v11  ;;  %v4744_v10 = vld [vmem:[%s6441_s1 + $0x780] ss:$20 sps:$4 sm:$0xff]  }
  0x88   :  { %1771 = vmatprep.subr.bf16.mxu0 %v4659_v13  ;;  %1943 = vmatprep.subr.bf16.mxu1 %v4662_v14  ;;  %v4750_v11 = vld [vmem:[%s6441_s1 + $0x78c] ss:$20 sps:$4 sm:$0xff]   ;;  %v4754_v13 = vld [vmem:[%s6441_s1 + $0x290] ss:$20 sps:$4 sm:$0xff]  }
  0x89   :  { %v4757_v14 = vld [vmem:[%s6441_s1 + $0x3f8] ss:$20 sps:$4 sm:$0xff]  }
  0x8b   :  { %1772 = vmatpush1.bf16.msra.mxu0 %v4657_v15  ;;  %1944 = vmatpush1.bf16.msra.mxu1 %v4660_v16  ;;  %v5017_v15 = vmov 0   ;;  %v4758_v16 = vld [vmem:[%s6441_s1 + $0x2b8] ss:$20 sps:$4 sm:$0xff]  }
  0x8c   :  { %1773 = vmatprep.subr.bf16.mxu0 %v4665_v17  ;;  %1945 = vmatprep.subr.bf16.mxu1 %v4668_v18  ;;  %v4761_v17 = vld [vmem:[%s6441_s1 + $0x420] ss:$20 sps:$4 sm:$0xff]  }
  0x8d   :  { %v4762_v18 = vld [vmem:[%s6441_s1 + $0x2e0] ss:$20 sps:$4 sm:$0xff]  }
  0x8f   :  { %1774 = vmatpush1.bf16.msra.mxu0 %v4663_v19  ;;  %1946 = vmatpush1.bf16.msra.mxu1 %v4666_v20  ;;  %v4765_v19 = vld [vmem:[%s6441_s1 + $0x448] ss:$20 sps:$4 sm:$0xff]   ;;  %v5725_v20 = vld [vmem:[%s6442_s0 + $0x18] ss:$28 sps:$4 sm:$0xff]  }
  0x90   :  { %1775 = vmatprep.subr.bf16.mxu0 %v4671_v21  ;;  %1947 = vmatprep.subr.bf16.mxu1 %v4674_v22  ;;  %v4751_v21 = vld [vmem:[%s6441_s1 + $0x150] ss:$20 sps:$4 sm:$0xff]   ;;  %v4766_v22 = vld [vmem:[%s6441_s1 + $0x308] ss:$20 sps:$4 sm:$0xff]  }
  0x93   :  { %1776 = vmatpush1.bf16.msra.mxu0 %v4669_v23  ;;  %1948 = vmatpush1.bf16.msra.mxu1 %v4672_v24  ;;  %v4769_v23 = vld [vmem:[%s6441_s1 + $0x470] ss:$20 sps:$4 sm:$0xff]  }
  0x94   :  { %1777 = vmatprep.subr.bf16.mxu0 %v4677_v25  ;;  %1949 = vmatprep.subr.bf16.mxu1 %v4680_v26  ;;  %v4770_v24 = vld [vmem:[%s6441_s1 + $0x330] ss:$20 sps:$4 sm:$0xff]   ;;  %v4773_v25 = vld [vmem:[%s6441_s1 + $0x498] ss:$20 sps:$4 sm:$0xff]  }
  0x95   :  { %v4752_v26 = vld [vmem:[%s6441_s1 + $0x10] ss:$20 sps:$4 sm:$0xff]  }
  0x97   :  { %1778 = vmatpush1.bf16.msra.mxu0 %v4675_v27  ;;  %1950 = vmatpush1.bf16.msra.mxu1 %v4678_v28  ;;  %v4755_v27 = vld [vmem:[%s6441_s1 + $0x178] ss:$20 sps:$4 sm:$0xff]  }
  0x98   :  { %1779 = vmatprep.subr.bf16.mxu0 %v4683_v29  ;;  %1951 = vmatprep.subr.bf16.mxu1 %v4686_v31  ;;  %v4774_v28 = vld [vmem:[%s6441_s1 + $0x358] ss:$20 sps:$4 sm:$0xff]   ;;  %v4777_v29 = vld [vmem:[%s6441_s1 + $0x4c0] ss:$20 sps:$4 sm:$0xff]  }
  0x99   :  { %v4756_v31 = vld [vmem:[%s6441_s1 + $0x38] ss:$20 sps:$4 sm:$0xff]  }
  0x9b   :  { %1780 = vmatpush1.bf16.msra.mxu0 %v4681_v32  ;;  %1952 = vmatpush1.bf16.msra.mxu1 %v4684_v33  ;;  %v4759_v32 = vld [vmem:[%s6441_s1 + $0x1a0] ss:$20 sps:$4 sm:$0xff]  }
  0x9c   :  { %1781 = vmatprep.subr.bf16.mxu0 %v4689_v34  ;;  %1953 = vmatprep.subr.bf16.mxu1 %v4692_v35  ;;  %v4778_v33 = vld [vmem:[%s6441_s1 + $0x380] ss:$20 sps:$4 sm:$0xff]   ;;  %v4781_v34 = vld [vmem:[%s6441_s1 + $0x4e8] ss:$20 sps:$4 sm:$0xff]  }
  0x9d   :  { %v5015_v35 = vld [vmem:[%s6442_s0 + $0x4] ss:$28 sps:$4 sm:$0xff]  }
  0x9f   :  { %1782 = vmatpush1.bf16.msra.mxu0 %v4687_v36  ;;  %1954 = vmatpush1.bf16.msra.mxu1 %v4690_v37  ;;  %v4760_v36 = vld [vmem:[%s6441_s1 + $0x60] ss:$20 sps:$4 sm:$0xff]   ;;  %v4763_v37 = vld [vmem:[%s6441_s1 + $0x1c8] ss:$20 sps:$4 sm:$0xff]  }
  0xa0   :  { %1783 = vmatprep.subr.bf16.mxu0 %v4695_v38  ;;  %1955 = vmatprep.subr.bf16.mxu1 %v4698_v39  ;;  %v4782_v38 = vld [vmem:[%s6441_s1 + $0x3a8] ss:$20 sps:$4 sm:$0xff]  }
  0xa1   :  { %v4764_v39 = vld [vmem:[%s6441_s1 + $0x88] ss:$20 sps:$4 sm:$0xff]  }
  0xa3   :  { %1784 = vmatpush1.bf16.msra.mxu0 %v4693_v40  ;;  %1956 = vmatpush1.bf16.msra.mxu1 %v4696_v41  ;;  %v4767_v40 = vld [vmem:[%s6441_s1 + $0x1f0] ss:$20 sps:$4 sm:$0xff]  }
  0xa4   :  { %1785 = vmatprep.subr.bf16.mxu0 %v4701_v42  ;;  %1957 = vmatprep.subr.bf16.mxu1 %v4704_v43  ;;  %v4799_v41 = vld [vmem:[%s6441_s1 + $0x790] ss:$20 sps:$4 sm:$0xff]  }
  0xa5   :  { %v4802_v42 = vld [vmem:[%s6443_s3 + $0x4] ss:$12 sps:$4 sm:$0xff]  }
  0xa6   :  { %v4768_v43 = vld [vmem:[%s6441_s1 + $0xb0] ss:$20 sps:$4 sm:$0xff]  }
  0xa7   :  { %1786 = vmatpush1.bf16.msra.mxu0 %v4699_v44  ;;  %1958 = vmatpush1.bf16.msra.mxu1 %v4702_v45  ;;  %v5018_v44 = vmov 0.0   ;;  %v4771_v45 = vld [vmem:[%s6441_s1 + $0x218] ss:$20 sps:$4 sm:$0xff]  }
  0xa8   :  { %1787 = vmatprep.subr.bf16.mxu0 %v4707_v46  ;;  %1959 = vmatprep.subr.bf16.mxu1 %v4710_v47  ;;  %v4772_v46 = vld [vmem:[%s6441_s1 + $0xd8] ss:$20 sps:$4 sm:$0xff]   ;;  %v4775_v47 = vld [vmem:[%s6441_s1 + $0x240] ss:$20 sps:$4 sm:$0xff]  }
  0xab   :  { %1788 = vmatpush1.bf16.msra.mxu0 %v4705_v48  ;;  %1960 = vmatpush1.bf16.msra.mxu1 %v4708_v49  ;;  %v4800_v48 = vld [vmem:[%s6443_s3] ss:$12 sps:$4 sm:$0xff]  }
  0xac   :  { %1789 = vmatprep.subr.bf16.mxu0 %v4713_v50  ;;  %1961 = vmatprep.subr.bf16.mxu1 %v4716_v51  ;;  %v4776_v49 = vld [vmem:[%s6441_s1 + $0x100] ss:$20 sps:$4 sm:$0xff]   ;;  %v4779_v50 = vld [vmem:[%s6441_s1 + $0x268] ss:$20 sps:$4 sm:$0xff]   ;;  %v4803_v51 = vld [vmem:[%s6443_s3 + $0x18] ss:$12 sps:$4 sm:$0xff]  }
  0xaf   :  { %1790 = vmatpush1.bf16.msra.mxu0 %v4711_v52  ;;  %1962 = vmatpush1.bf16.msra.mxu1 %v4714_v53  ;;  %v4808_v52 = vld [vmem:[%s6443_s3 + $0x34] ss:$12 sps:$4 sm:$0xff]   ;;  %v4780_v53 = vld [vmem:[%s6441_s1 + $0x128] ss:$20 sps:$4 sm:$0xff]  }
  0xb0   :  { %1791 = vmatprep.subr.bf16.mxu0 %v4719_v54  ;;  %1963 = vmatprep.subr.bf16.mxu1 %v4722_v55  ;;  %v4783_v54 = vld [vmem:[%s6441_s1 + $0x650] ss:$20 sps:$4 sm:$0xff]  }
  0xb1   :  { %v4806_v55 = vld [vmem:[%s6443_s3 + $0x30] ss:$12 sps:$4 sm:$0xff]  }
  0xb3   :  { %1792 = vmatpush1.bf16.msra.mxu0 %v4717_v56  ;;  %1964 = vmatpush1.bf16.msra.mxu1 %v4720_v57  ;;  %v4811_v56 = vld [vmem:[%s6443_s3 + $0x4c] ss:$12 sps:$4 sm:$0xff]   ;;  %v4784_v57 = vld [vmem:[%s6441_s1 + $0x510] ss:$20 sps:$4 sm:$0xff]  }
  0xb4   :  { %1793 = vmatprep.subr.bf16.mxu0 %v4725_v58  ;;  %1965 = vmatprep.subr.bf16.mxu1 %v4728_v59  ;;  %v4785_v58 = vld [vmem:[%s6441_s1 + $0x678] ss:$20 sps:$4 sm:$0xff]   ;;  %v4809_v59 = vld [vmem:[%s6443_s3 + $0x48] ss:$12 sps:$4 sm:$0xff]  }
  0xb7   :  { %1794 = vmatpush1.bf16.msra.mxu0 %v4723_v60  ;;  %1966 = vmatpush1.bf16.msra.mxu1 %v4726_v61  ;;  %v4814_v60 = vld [vmem:[%s6443_s3 + $0x64] ss:$12 sps:$4 sm:$0xff]   ;;  %v5016_v61 = vld [vmem:[%s6442_s0] ss:$28 sps:$4 sm:$0xff]  }
  0xb8   :  { %1795 = vmatprep.subr.bf16.mxu0 %v4731_v62  ;;  %1967 = vmatprep.subr.bf16.mxu1 %v4734_v63  ;;  %v4786_v62 = vld [vmem:[%s6441_s1 + $0x538] ss:$20 sps:$4 sm:$0xff]   ;;  %v4787_v63 = vld [vmem:[%s6441_s1 + $0x6a0] ss:$20 sps:$4 sm:$0xff]  }
  0xbb   :  { %1796 = vmatpush1.bf16.msra.mxu0 %v4729_v0  ;;  %1968 = vmatpush1.bf16.msra.mxu1 %v4732_v1  ;;  %v4812_v0 = vld [vmem:[%s6443_s3 + $0x60] ss:$12 sps:$4 sm:$0xff]   ;;  %v4817_v1 = vld [vmem:[%s6443_s3 + $0x7c] ss:$12 sps:$4 sm:$0xff]  }
  0xbc   :  { %1797 = vmatprep.subr.bf16.mxu0 %v4737_v2  ;;  %1969 = vmatprep.subr.bf16.mxu1 %v4740_v3  ;;  %v4789_v2 = vld [vmem:[%s6441_s1 + $0x6c8] ss:$20 sps:$4 sm:$0xff]   ;;  %v4815_v3 = vld [vmem:[%s6443_s3 + $0x78] ss:$12 sps:$4 sm:$0xff]  }
  0xbf   :  { %1798 = vmatpush1.bf16.msra.mxu0 %v4735_v4  ;;  %1970 = vmatpush1.bf16.msra.mxu1 %v4738_v6  ;;  %v4820_v4 = vld [vmem:[%s6443_s3 + $0x94] ss:$12 sps:$4 sm:$0xff]   ;;  %v4790_v6 = vld [vmem:[%s6441_s1 + $0x588] ss:$20 sps:$4 sm:$0xff]  }
  0xc0   :  { %1810 = vmatprep.subr.bf16.mxu0 %v4746_v7  ;;  %4237 = vmatprep.subr.bf16.mxu1 %v4753_v8  ;;  %v4791_v7 = vld [vmem:[%s6441_s1 + $0x6f0] ss:$20 sps:$4 sm:$0xff]  }
  0xc1   :  { %v4818_v8 = vld [vmem:[%s6443_s3 + $0x90] ss:$12 sps:$4 sm:$0xff]  }
  0xc2   :  { %1800 = vmatmul.mubr.bf16.vlgmr.msra.gmra.mrb[0].mxu0 %v5692_v9  ;;  %1972 = vmatmul.mubr.bf16.vlgmr.msra.gmra.mrb[0].mxu1 %v5692_v9 }
  0xc3   :  { %1811 = vmatpush1.bf16.msra.mxu0 %v4744_v10  ;;  %1842 = vmatprep.mubr.bf16.mxu0 %v5017_v15  ;;  %v4823_v10 = vld [vmem:[%s6443_s3 + $0xac] ss:$12 sps:$4 sm:$0xff]  }
  0xc4   :  { %1982 = vmatprep.subr.bf16.mxu0 %v4750_v11  ;;  %4238 = vmatpush3.bf16.msra.mxu1 %v4754_v13  ;;  %v4792_v11 = vld [vmem:[%s6441_s1 + $0x5b0] ss:$20 sps:$4 sm:$0xff]   ;;  %v4793_v13 = vld [vmem:[%s6441_s1 + $0x718] ss:$20 sps:$4 sm:$0xff]  }
  0xc5   :  { %4239 = vmatprep.subr.bf16.mxu1 %v4757_v14  ;;  %2098 = vmatprep.mubr.bf16.mxu1 %v5365_v30  ;;  %v4748_v30 = vld [vmem:[%s6441_s1 + $0x788] ss:$20 sps:$4 sm:$0xff]  }
  0xc6   :  { %v4821_v14 = vld [vmem:[%s6443_s3 + $0xa8] ss:$12 sps:$4 sm:$0xff]  }
  0xc8   :  { %4240 = vmatpush3.bf16.msra.mxu1 %v4758_v16  ;;  %v4826_v16 = vld [vmem:[%s6443_s3 + $0xc4] ss:$12 sps:$4 sm:$0xff]  }
  0xc9   :  { %4241 = vmatprep.subr.bf16.mxu1 %v4761_v17  ;;  %v4794_v17 = vld [vmem:[%s6441_s1 + $0x5d8] ss:$20 sps:$4 sm:$0xff]  }
  0xcc   :  { %4242 = vmatpush3.bf16.msra.mxu1 %v4762_v18  ;;  %v4795_v18 = vld [vmem:[%s6441_s1 + $0x740] ss:$20 sps:$4 sm:$0xff]  }
  0xcd   :  { %4243 = vmatprep.subr.bf16.mxu1 %v4765_v19  ;;  %v4824_v19 = vld [vmem:[%s6443_s3 + $0xc0] ss:$12 sps:$4 sm:$0xff]  }
  0xce   :  { %4043 = vmatmul.mubr.msk.bf16.vlgmr.msra.gmra.mrb[0].mxu0 %vm1677_vm0, %v5725_v20 }
  0xcf   :  { %1983 = vmatpush1.bf16.msra.mxu0 %v4748_v30  ;;  %2014 = vmatprep.mubr.bf16.mxu0 %v5017_v15  ;;  %v4796_v30 = vld [vmem:[%s6441_s1 + $0x600] ss:$20 sps:$4 sm:$0xff]  }
  0xd0   :  { %4215 = vmatprep.subr.bf16.mxu0 %v4751_v21  ;;  %4244 = vmatpush3.bf16.msra.mxu1 %v4766_v22  ;;  %v4797_v21 = vld [vmem:[%s6441_s1 + $0x768] ss:$20 sps:$4 sm:$0xff]   ;;  %v4829_v22 = vld [vmem:[%s6443_s3 + $0xd8] ss:$12 sps:$4 sm:$0xff]  }
  0xd1   :  { %4245 = vmatprep.subr.bf16.mxu1 %v4769_v23  ;;  %v4836_v23 = vld [vmem:[%s6443_s3 + $0xf4] ss:$12 sps:$4 sm:$0xff]  }
  0xd4   :  { %4246 = vmatpush3.bf16.msra.mxu1 %v4770_v24  ;;  %v4798_v24 = vld [vmem:[%s6441_s1 + $0x628] ss:$20 sps:$4 sm:$0xff]  }
  0xd5   :  { %4247 = vmatprep.subr.bf16.mxu1 %v4773_v25  ;;  %v4827_v25 = vld [vmem:[%s6443_s3 + $0xc8] ss:$12 sps:$4 sm:$0xff]  }
  0xd6   :  { %4044 = vmatmul.mubr.msk.bf16.vlgmr.msra.gmra.mrb[4].mxu0 %vm1677_vm0, %v5725_v20 }
  0xd7   :  { %4216 = vmatpush3.bf16.msra.mxu0 %v4752_v26  ;;  %2057 = vmatprep.mubr.bf16.mxu0 %v5015_v35  ;;  %v4834_v26 = vld [vmem:[%s6443_s3 + $0xf0] ss:$12 sps:$4 sm:$0xff]  }
  0xd8   :  { %4217 = vmatprep.subr.bf16.mxu0 %v4755_v27  ;;  %4248 = vmatpush3.bf16.msra.mxu1 %v4774_v28  ;;  %v4828_v27 = vld [vmem:[%s6443_s3 + $0x8] ss:$12 sps:$4 sm:$0xff]   ;;  %v4832_v28 = vld [vmem:[%s6443_s3 + $0xe0] ss:$12 sps:$4 sm:$0xff]  }
  0xd9   :  { %4249 = vmatprep.subr.bf16.mxu1 %v4777_v29  ;;  %v4841_v29 = vld [vmem:[%s6443_s3 + $0x10c] ss:$12 sps:$4 sm:$0xff]   ;;  %v4851_v35 = vld [vmem:[%s6443_s3 + $0x13c] ss:$12 sps:$4 sm:$0xff]  }
  0xdb   :  { %4218 = vmatpush3.bf16.msra.mxu0 %v4756_v31  ;;  %v4833_v31 = vld [vmem:[%s6443_s3 + $0x20] ss:$12 sps:$4 sm:$0xff]  }
  0xdc   :  { %4219 = vmatprep.subr.bf16.mxu0 %v4759_v32  ;;  %4250 = vmatpush3.bf16.msra.mxu1 %v4778_v33  ;;  %v4839_v32 = vld [vmem:[%s6443_s3 + $0x108] ss:$12 sps:$4 sm:$0xff]   ;;  %v4837_v33 = vld [vmem:[%s6443_s3 + $0xf8] ss:$12 sps:$4 sm:$0xff]  }
  0xdd   :  { %4251 = vmatprep.subr.bf16.mxu1 %v4781_v34  ;;  %v4846_v34 = vld [vmem:[%s6443_s3 + $0x124] ss:$12 sps:$4 sm:$0xff]  }
  0xdf   :  { %4220 = vmatpush3.bf16.msra.mxu0 %v4760_v36  ;;  %v4838_v36 = vld [vmem:[%s6443_s3 + $0x38] ss:$12 sps:$4 sm:$0xff]  }
  0xe0   :  { %4221 = vmatprep.subr.bf16.mxu0 %v4763_v37  ;;  %4252 = vmatpush3.bf16.msra.mxu1 %v4782_v38  ;;  %v4842_v37 = vld [vmem:[%s6443_s3 + $0x110] ss:$12 sps:$4 sm:$0xff]   ;;  %v4849_v38 = vld [vmem:[%s6443_s3 + $0x138] ss:$12 sps:$4 sm:$0xff]  }
  0xe1   :  { %4360 = vmatprep.subr.bf16.mxu1 %v5018_v44 }
  0xe3   :  { %4222 = vmatpush3.bf16.msra.mxu0 %v4764_v39  ;;  %2099 = vmatmul.mubr.bf16.vlgmr.msra.gmra.mrb[4].mxu1 %v5486_v5  ;;  %v4805_v5 = vld [vmem:[%s6443_s3 + $0x1c] ss:$12 sps:$4 sm:$0xff]  }
  0xe4   :  { %4223 = vmatprep.subr.bf16.mxu0 %v4767_v40  ;;  %4361 = vmatpush3.bf16.msra.mxu1 %v4799_v41  ;;  %v4843_v39 = vld [vmem:[%s6443_s3 + $0x50] ss:$12 sps:$4 sm:$0xff]   ;;  %v4847_v40 = vld [vmem:[%s6443_s3 + $0x128] ss:$12 sps:$4 sm:$0xff]  }
  0xe5   :  { %4362 = vmatprep.mubr.msk.bf16.mxu1 %vm5019_vm1, %v5018_v44  ;;  %2885 = vmatprep.subr.bf16.mxu1 %v4802_v42  ;;  %v4856_v41 = vld [vmem:[%s6443_s3 + $0x154] ss:$12 sps:$4 sm:$0xff]  }
  0xe6   :  { %v4848_v42 = vld [vmem:[%s6443_s3 + $0x68] ss:$12 sps:$4 sm:$0xff]  }
  0xe7   :  { %4224 = vmatpush3.bf16.msra.mxu0 %v4768_v43  ;;  %v4854_v43 = vld [vmem:[%s6443_s3 + $0x150] ss:$12 sps:$4 sm:$0xff]  }
  0xe8   :  { %4225 = vmatprep.subr.bf16.mxu0 %v4771_v45  ;;  %v4852_v45 = vld [vmem:[%s6443_s3 + $0x140] ss:$12 sps:$4 sm:$0xff]  }
  0xeb   :  { %4226 = vmatpush3.bf16.msra.mxu0 %v4772_v46  ;;  %4363 = vmatmul.mubr.msk.bf16.vlgmr.msra.gmra.mrb[8].mxu1 %vm1677_vm0, %v5725_v20  ;;  %v4831_v20 = vld [vmem:[%s6443_s3 + $0xdc] ss:$12 sps:$4 sm:$0xff]   ;;  %v4861_v46 = vld [vmem:[%s6443_s3 + $0x16c] ss:$12 sps:$4 sm:$0xff]  }
  0xec   :  { %4227 = vmatprep.subr.bf16.mxu0 %v4775_v47  ;;  %2886 = vmatpush1.bf16.msra.mxu1 %v4800_v48  ;;  %v4853_v47 = vld [vmem:[%s6443_s3 + $0x80] ss:$12 sps:$4 sm:$0xff]   ;;  %v4859_v48 = vld [vmem:[%s6443_s3 + $0x168] ss:$12 sps:$4 sm:$0xff]  }
  0xed   :  { %2887 = vmatprep.subr.bf16.mxu1 %v4805_v5  ;;  %v4857_v5 = vld [vmem:[%s6443_s3 + $0x158] ss:$12 sps:$4 sm:$0xff]  }
  0xef   :  { %4228 = vmatpush3.bf16.msra.mxu0 %v4776_v49  ;;  %v4866_v49 = vld [vmem:[%s6443_s3 + $0x184] ss:$12 sps:$4 sm:$0xff]  }
  0xf0   :  { %4229 = vmatprep.subr.bf16.mxu0 %v4779_v50  ;;  %2888 = vmatpush1.bf16.msra.mxu1 %v4803_v51  ;;  %v4858_v50 = vld [vmem:[%s6443_s3 + $0x98] ss:$12 sps:$4 sm:$0xff]   ;;  %v4862_v51 = vld [vmem:[%s6443_s3 + $0x170] ss:$12 sps:$4 sm:$0xff]  }
  0xf1   :  { %2889 = vmatprep.subr.bf16.mxu1 %v4808_v52  ;;  %v4863_v52 = vld [vmem:[%s6443_s3 + $0xb0] ss:$12 sps:$4 sm:$0xff]  }
  0xf3   :  { %4230 = vmatpush3.bf16.msra.mxu0 %v4780_v53  ;;  %v4867_v53 = vld [vmem:[%s6443_s3 + $0x248] ss:$12 sps:$4 sm:$0xff]  }
  0xf4   :  { %4259 = vmatprep.subr.bf16.mxu0 %v4783_v54  ;;  %2890 = vmatpush1.bf16.msra.mxu1 %v4806_v55  ;;  %v343_v54 = vlaneseq }
  0xf5   :  { %2891 = vmatprep.subr.bf16.mxu1 %v4811_v56 }
  0xf6   :  { %2058 = vmatmul.mubr.bf16.vlgmr.msra.gmra.mrb[8].mxu0 %v5016_v61 }
  0xf7   :  { %4260 = vmatpush3.bf16.msra.mxu0 %v4784_v57  ;;  %2139 = vmatprep.mubr.bf16.mxu0 %v5511_v12  ;;  %v4788_v12 = vld [vmem:[%s6441_s1 + $0x560] ss:$20 sps:$4 sm:$0xff]  }
  0xf8   :  { %4261 = vmatprep.subr.bf16.mxu0 %v4785_v58  ;;  %2892 = vmatpush1.bf16.msra.mxu1 %v4809_v59  ;;  %v6025_v58 = vshrl.u32 %v343_v54, 7  ;;  %v4887_v54 = vld [vmem:[%s6443_s3 + $0x2a8] ss:$12 sps:$4 sm:$0xff]  }
  0xf9   :  { %2893 = vmatprep.subr.bf16.mxu1 %v4814_v60 }
  0xfa   :  { %v6028_v60 = vsub.s32 0, %v6025_v58  ;;  %v6031_v61 = vsub.s32 1, %v6025_v58 }
  0xfb   :  { %4262 = vmatpush3.bf16.msra.mxu0 %v4786_v62  ;;  %v6036_v62 = vld [vmem:[%s6444_s2] sm:$0x1f] }
  0xfc   :  { %4263 = vmatprep.subr.bf16.mxu0 %v4787_v63  ;;  %2894 = vmatpush1.bf16.msra.mxu1 %v4812_v0  ;;  %v346_v63 = vrot.slane %v6036_v62, %v6028_v60  ;;  %v350_v0 = vrot.slane %v6036_v62, %v6031_v61 }
  0xfd   :  { %2895 = vmatprep.subr.bf16.mxu1 %v4817_v1  ;;  %v353_v1 = vsub.s32 2, %v6025_v58 }
  0xff   :  { %4264 = vmatpush3.bf16.msra.mxu0 %v4788_v12  ;;  %v357_v12 = vsub.s32 3, %v6025_v58 }
 0x100   :  { %4265 = vmatprep.subr.bf16.mxu0 %v4789_v2  ;;  %2896 = vmatpush1.bf16.msra.mxu1 %v4815_v3 }
 0x101   :  { %2897 = vmatprep.subr.bf16.mxu1 %v4820_v4 }
 0x103   :  { %4266 = vmatpush3.bf16.msra.mxu0 %v4790_v6 }
 0x104   :  { %4267 = vmatprep.subr.bf16.mxu0 %v4791_v7  ;;  %2898 = vmatpush1.bf16.msra.mxu1 %v4818_v8  ;;  %v354_v8 = vrot.slane %v6036_v62, %v353_v1 }
 0x105   :  { %2899 = vmatprep.subr.bf16.mxu1 %v4823_v10 }
 0x107   :  { %4268 = vmatpush3.bf16.msra.mxu0 %v4792_v11 }
 0x108   :  { %4269 = vmatprep.subr.bf16.mxu0 %v4793_v13  ;;  %2900 = vmatpush1.bf16.msra.mxu1 %v4821_v14  ;;  %v358_v13 = vrot.slane %v6036_v62, %v357_v12 }
 0x109   :  { %2901 = vmatprep.subr.bf16.mxu1 %v4826_v16 }
 0x10b   :  { %4270 = vmatpush3.bf16.msra.mxu0 %v4794_v17 }
 0x10c   :  { %4271 = vmatprep.subr.bf16.mxu0 %v4795_v18  ;;  %2902 = vmatpush1.bf16.msra.mxu1 %v4824_v19 }
 0x10d   :  { %2903 = vmatprep.subr.bf16.mxu1 %v4831_v20 }
 0x10f   :  { %4272 = vmatpush3.bf16.msra.mxu0 %v4796_v30 }
 0x110   :  { %4273 = vmatprep.subr.bf16.mxu0 %v4797_v21  ;;  %2904 = vmatpush1.bf16.msra.mxu1 %v4829_v22 }
 0x111   :  { %2905 = vmatprep.subr.bf16.mxu1 %v4836_v23 }
 0x113   :  { %4274 = vmatpush3.bf16.msra.mxu0 %v4798_v24  ;;  %v4864_v24 = vld [vmem:[%s6443_s3 + $0x180] ss:$12 sps:$4 sm:$0xff]  }
 0x114   :  { %4283 = vmatprep.subr.bf16.mxu0 %v4827_v25  ;;  %2906 = vmatpush1.bf16.msra.mxu1 %v4834_v26  ;;  %v4868_v25 = vld [vmem:[%s6443_s3 + $0x188] ss:$12 sps:$4 sm:$0xff]  }
 0x115   :  { %2907 = vmatprep.subr.bf16.mxu1 %v4841_v29  ;;  %v4871_v29 = vld [vmem:[%s6443_s3 + $0x19c] ss:$12 sps:$4 sm:$0xff]  }
 0x116   :  { %2140 = vmatmul.mubr.bf16.vlgmr.msra.gmra.mrb[12].mxu0 %v5692_v9  ;;  %v4844_v9 = vld [vmem:[%s6443_s3 + $0x120] ss:$12 sps:$4 sm:$0xff]  }
 0x117   :  { %4284 = vmatpush3.bf16.msra.mxu0 %v4828_v27 }
 0x118   :  { %4285 = vmatprep.subr.bf16.mxu0 %v4832_v28  ;;  %2908 = vmatpush1.bf16.msra.mxu1 %v4839_v32 }
 0x119   :  { %2909 = vmatprep.subr.bf16.mxu1 %v4846_v34 }
 0x11b   :  { %4286 = vmatpush3.bf16.msra.mxu0 %v4833_v31  ;;  %v4872_v31 = vld [vmem:[%s6443_s3 + $0x260] ss:$12 sps:$4 sm:$0xff]  }
 0x11c   :  { %4287 = vmatprep.subr.bf16.mxu0 %v4837_v33  ;;  %2910 = vmatpush1.bf16.msra.mxu1 %v4844_v9 }
 0x11d   :  { %2911 = vmatprep.subr.bf16.mxu1 %v4851_v35 }
 0x11f   :  { %4288 = vmatpush3.bf16.msra.mxu0 %v4838_v36 }
 0x120   :  { %4289 = vmatprep.subr.bf16.mxu0 %v4842_v37  ;;  %2912 = vmatpush1.bf16.msra.mxu1 %v4849_v38  ;;  %v4869_v37 = vld [vmem:[%s6443_s3 + $0x198] ss:$12 sps:$4 sm:$0xff]   ;;  %v4873_v38 = vld [vmem:[%s6443_s3 + $0x1a0] ss:$12 sps:$4 sm:$0xff]  }
 0x121   :  { %2913 = vmatprep.subr.bf16.mxu1 %v4856_v41  ;;  %v4876_v41 = vld [vmem:[%s6443_s3 + $0x1b4] ss:$12 sps:$4 sm:$0xff]  }
 0x123   :  { %4290 = vmatpush3.bf16.msra.mxu0 %v4843_v39 }
 0x124   :  { %4291 = vmatprep.subr.bf16.mxu0 %v4847_v40  ;;  %2914 = vmatpush1.bf16.msra.mxu1 %v4854_v43 }
 0x125   :  { %2915 = vmatprep.subr.bf16.mxu1 %v4861_v46 }
 0x127   :  { %4292 = vmatpush3.bf16.msra.mxu0 %v4848_v42  ;;  %v4877_v42 = vld [vmem:[%s6443_s3 + $0x278] ss:$12 sps:$4 sm:$0xff]  }
 0x128   :  { %4293 = vmatprep.subr.bf16.mxu0 %v4852_v45  ;;  %2916 = vmatpush1.bf16.msra.mxu1 %v4859_v48  ;;  %v4874_v48 = vld [vmem:[%s6443_s3 + $0x1b0] ss:$12 sps:$4 sm:$0xff]  }
 0x129   :  { %2928 = vmatprep.subr.bf16.mxu1 %v4866_v49  ;;  %v4881_v49 = vld [vmem:[%s6443_s3 + $0x1cc] ss:$12 sps:$4 sm:$0xff]  }
 0x12b   :  { %4294 = vmatpush3.bf16.msra.mxu0 %v4853_v47 }
 0x12c   :  { %4295 = vmatprep.subr.bf16.mxu0 %v4857_v5  ;;  %v4878_v5 = vld [vmem:[%s6443_s3 + $0x1b8] ss:$12 sps:$4 sm:$0xff]  }
 0x12f   :  { %4296 = vmatpush3.bf16.msra.mxu0 %v4858_v50  ;;  %v4882_v50 = vld [vmem:[%s6443_s3 + $0x290] ss:$12 sps:$4 sm:$0xff]  }
 0x130   :  { %4297 = vmatprep.subr.bf16.mxu0 %v4862_v51  ;;  %v4879_v51 = vld [vmem:[%s6443_s3 + $0x1c8] ss:$12 sps:$4 sm:$0xff]  }
 0x133   :  { %4298 = vmatpush3.bf16.msra.mxu0 %v4863_v52  ;;  %v4883_v52 = vld [vmem:[%s6443_s3 + $0x1d0] ss:$12 sps:$4 sm:$0xff]  }
 0x134   :  { %4305 = vmatprep.subr.bf16.mxu0 %v4867_v53  ;;  %v4886_v53 = vld [vmem:[%s6443_s3 + $0x1e4] ss:$12 sps:$4 sm:$0xff]  }
 0x195   :  { %v1973_v55 = vpop.f32.mrb[0].mxu1 }
 0x196   :  { %v1975_v56 = vpop.f32.mrb[1].mxu1  ;;  %v4396_v20 = vadd.f32 %v1973_v55, %v354_v8 }
 0x197   :  { %v1977_v57 = vpop.f32.mrb[2].mxu1  ;;  %v4398_v21 = vadd.f32 %v1975_v56, %v358_v13 }
 0x198   :  { %v1979_v59 = vpop.f32.mrb[3].mxu1  ;;  %v4400_v26 = vadd.f32 %v1977_v57, %v354_v8  ;;  %v4896_v8 = vld [vmem:[%s6443_s3 + $0x214] ss:$12 sps:$4 sm:$0xff]  }
 0x199   :  { %v4402_v32 = vadd.f32 %v1979_v59, %v358_v13 }
 0x1a1   :  { %v1844_v2 = vpop.f32.mrb[0].mxu0 }
 0x1a2   :  { %v4392_v3 = vadd.f32 %v1844_v2, %v346_v63  ;;  %v1846_v4 = vpop.f32.mrb[1].mxu0  ;;  %v4891_v2 = vld [vmem:[%s6443_s3 + $0x1fc] ss:$12 sps:$4 sm:$0xff]  }
 0x1a3   :  { %v4393_v6 = vadd.f32 %v1846_v4, %v350_v0  ;;  %v1848_v7 = vpop.f32.mrb[2].mxu0 }
 0x1a4   :  { %v4394_v10 = vadd.f32 %v1848_v7, %v346_v63  ;;  %v1850_v11 = vpop.f32.mrb[3].mxu0  ;;  %v2189_v16 = vmax.f32 %v4392_v3, 0.0  ;;  %v4884_v63 = vld [vmem:[%s6443_s3 + $0x1e0] ss:$12 sps:$4 sm:$0xff]  }
 0x1a5   :  { %v4395_v14 = vadd.f32 %v1850_v11, %v350_v0  ;;  %v2190_v18 = vmax.f32 %v4393_v6, 0.0  ;;  %v4888_v0 = vld [vmem:[%s6443_s3 + $0x1e8] ss:$12 sps:$4 sm:$0xff]   ;;  %v4892_v3 = vld [vmem:[%s6443_s3 + $0x2c0] ss:$12 sps:$4 sm:$0xff]  }
 0x1a6   :  { %v2194_v17 = vmax.f32 %v4394_v10, 0.0  ;;  %v4889_v6 = vld [vmem:[%s6443_s3 + $0x1f8] ss:$12 sps:$4 sm:$0xff]   ;;  %v4893_v7 = vld [vmem:[%s6443_s3 + $0x200] ss:$12 sps:$4 sm:$0xff]  }
 0x1a7   :  { %v2195_v19 = vmax.f32 %v4395_v14, 0.0  ;;  %v4897_v10 = vld [vmem:[%s6443_s3 + $0x2d8] ss:$12 sps:$4 sm:$0xff]  }
 0x1a8   :  { %v2199_v30 = vpack.c.bf16 %v2194_v17, %v2189_v16  ;;  %v4894_v16 = vld [vmem:[%s6443_s3 + $0x210] ss:$12 sps:$4 sm:$0xff]   ;;  %v4898_v17 = vld [vmem:[%s6443_s3 + $0x218] ss:$12 sps:$4 sm:$0xff]  }
 0x1a9   :  { %v2200_v22 = vpack.c.bf16 %v2195_v19, %v2190_v18  ;;  %v2016_v23 = vpop.f32.mrb[4].mxu0  ;;  %v4901_v19 = vld [vmem:[%s6443_s3 + $0x22c] ss:$12 sps:$4 sm:$0xff]  }
 0x1aa   :  { %v4397_v27 = vadd.f32 %v4396_v20, %v2016_v23  ;;  %v2018_v28 = vpop.f32.mrb[5].mxu0  ;;  %v4902_v20 = vld [vmem:[%s6443_s3 + $0x2f0] ss:$12 sps:$4 sm:$0xff]  }
 0x1ab   :  { %v4399_v33 = vadd.f32 %v4398_v21, %v2018_v28  ;;  %v2020_v9 = vpop.f32.mrb[6].mxu0  ;;  %2917 = vmatprep.mubr.bf16.mxu1 %v2200_v22  ;;  %3046 = vmatprep.mubr.bf16.mxu0 %v2200_v22  ;;  %v4903_v21 = vld [vmem:[%s6443_s3 + $0x230] ss:$12 sps:$4 sm:$0xff]   ;;  %v361_v22 = vsub.s32 4, %v6025_v58 }
 0x1ac   :  { %v4401_v34 = vadd.f32 %v4400_v26, %v2020_v9  ;;  %v2022_v35 = vpop.f32.mrb[7].mxu0  ;;  %2918 = vmatmul.mubr.bf16.vlgmr.msra.gmra.mrb[12].mxu1 %v2199_v30  ;;  %3047 = vmatmul.mubr.bf16.vlgmr.msra.gmra.mrb[16].mxu0 %v2199_v30  ;;  %v2191_v39 = vmax.f32 %v4397_v27, 0.0  ;;  %v4899_v30 = vld [vmem:[%s6443_s3 + $0x228] ss:$12 sps:$4 sm:$0xff]   ;;  %v4906_v23 = vld [vmem:[%s6443_s3 + $0x244] ss:$12 sps:$4 sm:$0xff]  }
 0x1ad   :  { %v4403_v36 = vadd.f32 %v4402_v32, %v2022_v35  ;;  %2929 = vmatpush1.bf16.msra.mxu1 %v4864_v24  ;;  %4306 = vmatpush3.bf16.msra.mxu0 %v4868_v25  ;;  %v2192_v43 = vmax.f32 %v4399_v33, 0.0  ;;  %v4930_v24 = vld [vmem:[%s6443_s3 + $0x308] ss:$0 sps:$4 sm:$0xff]   ;;  %v362_v26 = vrot.slane %v6036_v62, %v361_v22  ;;  %v4904_v27 = vld [vmem:[%s6443_s3 + $0x240] ss:$12 sps:$4 sm:$0xff]  }
 0x1ae   :  { %v2196_v40 = vmax.f32 %v4401_v34, 0.0  ;;  %2930 = vmatprep.subr.bf16.mxu1 %v4871_v29  ;;  %4307 = vmatprep.subr.bf16.mxu0 %v4872_v31  ;;  %v4909_v29 = vld [vmem:[%s6443_s3 + $0x25c] ss:$12 sps:$4 sm:$0xff]   ;;  %v2883_v31 = vsel %vm2875_vm2, %v4930_v24, 0  ;;  %v4907_v35 = vld [vmem:[%s6443_s3 + $0x258] ss:$12 sps:$4 sm:$0xff]  }
 0x1af   :  { %v2197_v45 = vmax.f32 %v4403_v36, 0.0  ;;  %v4912_v36 = vld [vmem:[%s6443_s3 + $0x274] ss:$12 sps:$4 sm:$0xff]   ;;  %v4946_v22 = vld [vmem:[%s6445_s5 + $0x50] ss:$8 sps:$4 sm:$0xff]  }
 0x1b0   :  { %v6072_v46 = vpack.c.bf16 %v2196_v40, %v2191_v39  ;;  %v4910_v40 = vld [vmem:[%s6443_s3 + $0x270] ss:$12 sps:$4 sm:$0xff]   ;;  %v4949_v24 = vld [vmem:[%s6445_s5 + $0x60] ss:$8 sps:$4 sm:$0xff]  }
 0x1b1   :  { %v2202_v47 = vpack.c.bf16 %v2197_v45, %v2192_v43  ;;  %2931 = vmatpush1.bf16.msra.mxu1 %v4869_v37  ;;  %4308 = vmatpush3.bf16.msra.mxu0 %v4873_v38  ;;  %v4918_v43 = vld [vmem:[%s6443_s3 + $0x2a4] ss:$12 sps:$4 sm:$0xff]   ;;  %v4916_v45 = vld [vmem:[%s6443_s3 + $0x2a0] ss:$12 sps:$4 sm:$0xff]  }
 0x1b2   :  { %2932 = vmatprep.subr.bf16.mxu1 %v4876_v41  ;;  %4309 = vmatprep.subr.bf16.mxu0 %v4877_v42  ;;  %v4915_v41 = vld [vmem:[%s6443_s3 + $0x28c] ss:$12 sps:$4 sm:$0xff]   ;;  %v4913_v42 = vld [vmem:[%s6443_s3 + $0x288] ss:$12 sps:$4 sm:$0xff]  }
 0x1b3   :  { %2960 = vmatprep.mubr.bf16.mxu1 %v2202_v47  ;;  %3087 = vmatprep.mubr.bf16.mxu0 %v2202_v47  ;;  %v4921_v47 = vld [vmem:[%s6443_s3 + $0x2bc] ss:$12 sps:$4 sm:$0xff]  }
 0x1b5   :  { %2933 = vmatpush1.bf16.msra.mxu1 %v4874_v48  ;;  %4310 = vmatpush3.bf16.msra.mxu0 %v4878_v5  ;;  %v4919_v48 = vld [vmem:[%s6443_s3 + $0x2b8] ss:$12 sps:$4 sm:$0xff]   ;;  %v4924_v5 = vld [vmem:[%s6443_s3 + $0x2d4] ss:$12 sps:$4 sm:$0xff]  }
 0x1b6   :  { %2934 = vmatprep.subr.bf16.mxu1 %v4881_v49  ;;  %4311 = vmatprep.subr.bf16.mxu0 %v4882_v50  ;;  %v4253_v55 = vpop.f32.mrb[4].mxu1  ;;  %v4922_v49 = vld [vmem:[%s6443_s3 + $0x2d0] ss:$12 sps:$4 sm:$0xff]   ;;  %v4927_v50 = vld [vmem:[%s6443_s3 + $0x2ec] ss:$12 sps:$4 sm:$0xff]  }
 0x1b7   :  { %v4254_v56 = vpop.f32.mrb[5].mxu1 }
 0x1b8   :  { %v6098_v57 = vadd.f32 %v4254_v56, %v4253_v55  ;;  %v4256_v59 = vpop.f32.mrb[6].mxu1 }
 0x1b9   :  { %2935 = vmatpush1.bf16.msra.mxu1 %v4879_v51  ;;  %4312 = vmatpush3.bf16.msra.mxu0 %v4883_v52  ;;  %v4257_v12 = vpop.f32.mrb[7].mxu1  ;;  %v2332_v51 = vld [vmem:[%s6443_s3 + $0x300] sm:$0xff]  ;;  %v4925_v52 = vld [vmem:[%s6443_s3 + $0x2e8] ss:$12 sps:$4 sm:$0xff]  }
 0x1ba   :  { %2936 = vmatprep.subr.bf16.mxu1 %v4886_v53  ;;  %4313 = vmatprep.subr.bf16.mxu0 %v4887_v54  ;;  %v4258_v4 = vadd.f32 %v4257_v12, %v4256_v59  ;;  %v4143_v53 = vcombine.high %v2332_v51, %v2332_v51  ;;  %v4142_v54 = vcombine.low %v2332_v51, %v2332_v51  ;;  %v4998_v51 = vld [vmem:[%s6446_s7 + $0x18] sm:$0xff]  }
 0x1bd   :  { %2937 = vmatpush1.bf16.msra.mxu1 %v4884_v63  ;;  %4314 = vmatpush3.bf16.msra.mxu0 %v4888_v0 }
 0x1be   :  { %2938 = vmatprep.subr.bf16.mxu1 %v4891_v2  ;;  %4315 = vmatprep.subr.bf16.mxu0 %v4892_v3  ;;  %v6124_v11 = vpop.f32.mrb[8].mxu1 }
 0x1bf   :  { %v4364_v13 = vpop.f32.mrb[9].mxu1 }
 0x1c0   :  { %v6126_v14 = vpop.f32.mrb[10].mxu1  ;;  %v4933_v13 = vld [vmem:[%s6445_s5 + $0x4] ss:$8 sps:$4 sm:$0xff]  }
 0x1c1   :  { %2939 = vmatpush1.bf16.msra.mxu1 %v4889_v6  ;;  %4316 = vmatpush3.bf16.msra.mxu0 %v4893_v7  ;;  %v4365_v18 = vpop.f32.mrb[11].mxu1 }
 0x1c2   :  { %2940 = vmatprep.subr.bf16.mxu1 %v4896_v8  ;;  %4317 = vmatprep.subr.bf16.mxu0 %v4897_v10  ;;  %v4942_v18 = vld [vmem:[%s6445_s5 + $0x34] ss:$8 sps:$4 sm:$0xff]  }
 0x1c5   :  { %2941 = vmatpush1.bf16.msra.mxu1 %v4894_v16  ;;  %4318 = vmatpush3.bf16.msra.mxu0 %v4898_v17  ;;  %v4939_v16 = vld [vmem:[%s6445_s5 + $0x24] ss:$8 sps:$4 sm:$0xff]   ;;  %v4937_v17 = vld [vmem:[%s6445_s5 + $0x20] ss:$8 sps:$4 sm:$0xff]  }
 0x1c6   :  { %2942 = vmatprep.subr.bf16.mxu1 %v4901_v19  ;;  %4319 = vmatprep.subr.bf16.mxu0 %v4902_v20  ;;  %v4940_v19 = vld [vmem:[%s6445_s5 + $0x30] ss:$8 sps:$4 sm:$0xff]   ;;  %v4943_v20 = vld [vmem:[%s6445_s5 + $0x40] ss:$8 sps:$4 sm:$0xff]  }
 0x1c9   :  { %v4231_v25 = vpop.f32.mrb[8].mxu0  ;;  %2943 = vmatpush1.bf16.msra.mxu1 %v4899_v30  ;;  %4320 = vmatpush3.bf16.msra.mxu0 %v4903_v21  ;;  %v4945_v30 = vld [vmem:[%s6445_s5 + $0x44] ss:$8 sps:$4 sm:$0xff]   ;;  %v4948_v21 = vld [vmem:[%s6445_s5 + $0x54] ss:$8 sps:$4 sm:$0xff]  }
 0x1ca   :  { %v4232_v28 = vpop.f32.mrb[9].mxu0  ;;  %2944 = vmatprep.subr.bf16.mxu1 %v4906_v23  ;;  %4366 = vmatprep.subr.bf16.mxu0 %v5018_v44  ;;  %v4951_v23 = vld [vmem:[%s6445_s5 + $0x64] ss:$8 sps:$4 sm:$0xff]  }
 0x1cb   :  { %v4233_v32 = vadd.f32 %v4232_v28, %v4231_v25  ;;  %v4234_v33 = vpop.f32.mrb[10].mxu0  ;;  %v4954_v25 = vld [vmem:[%s6445_s5 + $0x74] ss:$8 sps:$4 sm:$0xff]   ;;  %v4955_v28 = vld [vmem:[%s6445_s5 + $0x80] ss:$8 sps:$4 sm:$0xff]  }
 0x1cc   :  { %v4235_v9 = vpop.f32.mrb[11].mxu0  ;;  %3088 = vmatmul.mubr.bf16.vlgmr.msra.gmra.mrb[20].mxu0 %v6072_v46 }
 0x1cd   :  { %v2060_v62 = vadd.f32 %v4233_v32, %v362_v26  ;;  %v4236_v34 = vadd.f32 %v4235_v9, %v4234_v33  ;;  %2945 = vmatpush1.bf16.msra.mxu1 %v4904_v27  ;;  %4367 = vmatpush3.bf16.msra.mxu0 %v2883_v31  ;;  %v4957_v27 = vld [vmem:[%s6445_s5 + $0x84] ss:$8 sps:$4 sm:$0xff]   ;;  %v4958_v31 = vld [vmem:[%s6445_s5 + $0x90] ss:$8 sps:$4 sm:$0xff]   ;;  %v4961_v33 = vld [vmem:[%s6445_s5 + $0xa0] ss:$8 sps:$4 sm:$0xff]  }
 0x1ce   :  { %2946 = vmatprep.subr.bf16.mxu1 %v4909_v29  ;;  %4368 = vmatprep.mubr.msk.bf16.mxu0 %vm5019_vm1, %v5018_v44  ;;  %v4960_v29 = vld [vmem:[%s6445_s5 + $0x94] ss:$8 sps:$4 sm:$0xff]   ;;  %v4963_v32 = vld [vmem:[%s6445_s5 + $0xa4] ss:$8 sps:$4 sm:$0xff]  }
 0x1cf   :  { %v2063_v37 = vadd.f32 %v4236_v34, %v362_v26  ;;  %v2101_v38 = vadd.f32 %v6098_v57, %v2060_v62  ;;  %v2877_v57 = vsel %vm2875_vm2, %v4142_v54, 0  ;;  %3402 = vmatprep.subr.bf16.mxu0 %v4933_v13  ;;  %v4952_v26 = vld [vmem:[%s6445_s5 + $0x70] ss:$8 sps:$4 sm:$0xff]   ;;  %v4966_v9 = vld [vmem:[%s6445_s5 + $0xb4] ss:$8 sps:$4 sm:$0xff]   ;;  %v5001_v54 = vld [vmem:[%s6446_s7 + $0x68] sm:$0xff]  }
 0x1d0   :  { %v4964_v62 = vld [vmem:[%s6445_s5 + $0xb0] ss:$8 sps:$4 sm:$0xff]   ;;  %v4969_v34 = vld [vmem:[%s6445_s5 + $0xc4] ss:$8 sps:$4 sm:$0xff]  }
 0x1d1   :  { %v2104_v39 = vadd.f32 %v4258_v4, %v2063_v37  ;;  %2947 = vmatpush1.bf16.msra.mxu1 %v4907_v35  ;;  %v4967_v35 = vld [vmem:[%s6445_s5 + $0xc0] ss:$8 sps:$4 sm:$0xff]   ;;  %v4970_v37 = vld [vmem:[%s6445_s5 + $0xd0] ss:$8 sps:$4 sm:$0xff]  }
 0x1d2   :  { %2948 = vmatprep.subr.bf16.mxu1 %v4912_v36  ;;  %v4972_v36 = vld [vmem:[%s6445_s5 + $0xd4] ss:$8 sps:$4 sm:$0xff]  }
 0x1d5   :  { %2949 = vmatpush1.bf16.msra.mxu1 %v4910_v40  ;;  %v4978_v40 = vld [vmem:[%s6445_s5 + $0xf4] ss:$8 sps:$4 sm:$0xff]  }
 0x1d6   :  { %2950 = vmatprep.subr.bf16.mxu1 %v4915_v41  ;;  %v4976_v41 = vld [vmem:[%s6445_s5 + $0xf0] ss:$8 sps:$4 sm:$0xff]  }
 0x1d9   :  { %2951 = vmatpush1.bf16.msra.mxu1 %v4913_v42  ;;  %v4981_v42 = vld [vmem:[%s6445_s5 + $0x104] ss:$8 sps:$4 sm:$0xff]  }
 0x1da   :  { %2952 = vmatprep.subr.bf16.mxu1 %v4918_v43  ;;  %v4991_v43 = vld [vmem:[%s6446_s7 + $0x40] sm:$0xff]  }
 0x1dd   :  { %2953 = vmatpush1.bf16.msra.mxu1 %v4916_v45  ;;  %v4992_v45 = vld [vmem:[%s6446_s7] sm:$0xff]  }
 0x1de   :  { %2954 = vmatprep.subr.bf16.mxu1 %v4921_v47  ;;  %v4993_v47 = vld [vmem:[%s6446_s7 + $0x48] sm:$0xff]  }
 0x1e1   :  { %2955 = vmatpush1.bf16.msra.mxu1 %v4919_v48  ;;  %v4994_v48 = vld [vmem:[%s6446_s7 + $0x8] sm:$0xff]  }
 0x1e2   :  { %2956 = vmatprep.subr.bf16.mxu1 %v4924_v5  ;;  %v4995_v5 = vld [vmem:[%s6446_s7 + $0x50] sm:$0xff]  }
 0x1e5   :  { %2957 = vmatpush1.bf16.msra.mxu1 %v4922_v49  ;;  %v4996_v49 = vld [vmem:[%s6446_s7 + $0x10] sm:$0xff]  }
 0x1e6   :  { %2958 = vmatprep.subr.bf16.mxu1 %v4927_v50  ;;  %v4997_v50 = vld [vmem:[%s6446_s7 + $0x58] sm:$0xff]  }
 0x1e9   :  { %v4275_v55 = vpop.f32.mrb[12].mxu0  ;;  %2959 = vmatpush1.bf16.msra.mxu1 %v4925_v52  ;;  %v4999_v52 = vld [vmem:[%s6446_s7 + $0x60] sm:$0xff]  }
 0x1ea   :  { %v4276_v56 = vpop.f32.mrb[13].mxu0  ;;  %4145 = vmatprep.subr.msk.bf16.mxu1 %vm2875_vm2, %v4143_v53  ;;  %v5000_v53 = vld [vmem:[%s6446_s7 + $0x20] sm:$0xff]  }
 0x1eb   :  { %v4277_v59 = vadd.f32 %v4276_v56, %v4275_v55  ;;  %v4278_v63 = vpop.f32.mrb[14].mxu0 }
 0x1ec   :  { %v4279_v0 = vpop.f32.mrb[15].mxu0  ;;  %2961 = vmatmul.mubr.bf16.vlgmr.msra.gmra.mrb[12].mxu1 %v6072_v46  ;;  %v4931_v46 = vld [vmem:[%s6445_s5] ss:$8 sps:$4 sm:$0xff]  }
 0x1ed   :  { %v4280_v12 = vadd.f32 %v4279_v0, %v4278_v63  ;;  %v2142_v2 = vadd.f32 %v4277_v59, %v2101_v38  ;;  %2972 = vmatpush1.bf16.msra.mxu1 %v2877_v57  ;;  %3003 = vmatprep.mubr.bf16.mxu1 %v5017_v15  ;;  %v4975_v38 = vld [vmem:[%s6445_s5 + $0xe4] ss:$8 sps:$4 sm:$0xff]  }
 0x1ee   :  { %4329 = vmatprep.subr.bf16.mxu1 %v4991_v43  ;;  %v5002_v43 = vld [vmem:[%s6446_s7 + $0x28] sm:$0xff]  }
 0x1ef   :  { %v2183_v3 = vadd.f32 %v6124_v11, %v2142_v2  ;;  %v2145_v4 = vadd.f32 %v4280_v12, %v2104_v39  ;;  %v4936_v11 = vld [vmem:[%s6445_s5 + $0x14] ss:$8 sps:$4 sm:$0xff]   ;;  %v4973_v39 = vld [vmem:[%s6445_s5 + $0xe0] ss:$8 sps:$4 sm:$0xff]  }
 0x1f0   :  { %v2334_v12 = vld [vmem:[%s6447_s4] sm:$0x7] }
 0x1f1   :  { %v2186_v6 = vadd.f32 %v6126_v14, %v2145_v4  ;;  %v2193_v7 = vmax.f32 %v2183_v3, 0.0  ;;  %v4934_v14 = vld [vmem:[%s6445_s5 + $0x10] ss:$8 sps:$4 sm:$0xff]   ;;  %v2347_v2 = vrot.slane %v2334_v12, %v353_v1 }
 0x1f3   :  { %v2198_v8 = vmax.f32 %v2186_v6, 0.0 }
 0x1f5   :  { %v2203_v10 = vpack.c.bf16 %v2198_v8, %v2193_v7 }
 0x1f7   :  { %4369 = vmatmul.mubr.msk.bf16.vlgmr.msra.gmra.mrb[24].mxu0 %vm2871_vm3, %v2203_v10 }
 0x1f8   :  { %4146 = vmatmul.mubr.msk.bf16.vlgmr.msra.gmra.mrb[12].mxu1 %vm2871_vm3, %v2203_v10  ;;  %3403 = vmatpush1.bf16.msra.mxu0 %v4931_v46 }
 0x1f9   :  { %3404 = vmatprep.subr.bf16.mxu0 %v4936_v11  ;;  %4330 = vmatpush3.bf16.msra.mxu1 %v4992_v45  ;;  %v5003_v45 = vld [vmem:[%s6446_s7 + $0x70] sm:$0xff]  }
 0x1fa   :  { %4331 = vmatprep.subr.bf16.mxu1 %v4993_v47  ;;  %v5004_v47 = vld [vmem:[%s6446_s7 + $0x30] sm:$0xff]  }
 0x1fc   :  { %3405 = vmatpush1.bf16.msra.mxu0 %v4934_v14 }
 0x1fd   :  { %3406 = vmatprep.subr.bf16.mxu0 %v4939_v16  ;;  %4332 = vmatpush3.bf16.msra.mxu1 %v4994_v48  ;;  %v2339_v16 = vrot.slane %v2334_v12, %v6028_v60  ;;  %v5005_v48 = vld [vmem:[%s6446_s7 + $0x78] sm:$0xff]  }
 0x1fe   :  { %4333 = vmatprep.subr.bf16.mxu1 %v4995_v5  ;;  %v5006_v5 = vld [vmem:[%s6446_s7 + $0x38] sm:$0xff]  }
 0x200   :  { %3407 = vmatpush1.bf16.msra.mxu0 %v4937_v17  ;;  %v2343_v17 = vrot.slane %v2334_v12, %v6031_v61 }
 0x201   :  { %3408 = vmatprep.subr.bf16.mxu0 %v4942_v18  ;;  %4334 = vmatpush3.bf16.msra.mxu1 %v4996_v49  ;;  %v3186_v49 = vld [vmem:[%s6449_s6] sm:$0x3] }
 0x202   :  { %4335 = vmatprep.subr.bf16.mxu1 %v4997_v50  ;;  %v3191_v50 = vrot.slane %v3186_v49, %v6028_v60  ;;  %v5007_v60 = vld [vmem:[%s6448_s9] sm:$0xff]  }
 0x204   :  { %3409 = vmatpush1.bf16.msra.mxu0 %v4940_v19 }
 0x205   :  { %3410 = vmatprep.subr.bf16.mxu0 %v4945_v30  ;;  %4336 = vmatpush3.bf16.msra.mxu1 %v4998_v51  ;;  %v3195_v51 = vrot.slane %v3186_v49, %v6031_v61  ;;  %v5008_v61 = vld [vmem:[%s6448_s9 + $0x8] sm:$0xff]  }
 0x206   :  { %4337 = vmatprep.subr.bf16.mxu1 %v4999_v52 }
 0x208   :  { %3411 = vmatpush1.bf16.msra.mxu0 %v4943_v20 }
 0x209   :  { %3412 = vmatprep.subr.bf16.mxu0 %v4948_v21  ;;  %4338 = vmatpush3.bf16.msra.mxu1 %v5000_v53 }
 0x20a   :  { %4339 = vmatprep.subr.bf16.mxu1 %v5001_v54 }
 0x20c   :  { %3413 = vmatpush1.bf16.msra.mxu0 %v4946_v22 }
 0x20d   :  { %3414 = vmatprep.subr.bf16.mxu0 %v4951_v23  ;;  %4340 = vmatpush3.bf16.msra.mxu1 %v5002_v43 }
 0x20e   :  { %4341 = vmatprep.subr.bf16.mxu1 %v5003_v45 }
 0x210   :  { %3415 = vmatpush1.bf16.msra.mxu0 %v4949_v24 }
 0x211   :  { %3416 = vmatprep.subr.bf16.mxu0 %v4954_v25  ;;  %4342 = vmatpush3.bf16.msra.mxu1 %v5004_v47 }
 0x212   :  { %4343 = vmatprep.subr.bf16.mxu1 %v5005_v48 }
 0x214   :  { %3417 = vmatpush1.bf16.msra.mxu0 %v4952_v26 }
 0x215   :  { %3418 = vmatprep.subr.bf16.mxu0 %v4957_v27  ;;  %4344 = vmatpush3.bf16.msra.mxu1 %v5006_v5 }
 0x216   :  { %4372 = vmatprep.subr.bf16.mxu1 %v5018_v44 }
 0x218   :  { %3419 = vmatpush1.bf16.msra.mxu0 %v4955_v28 }
 0x219   :  { %3420 = vmatprep.subr.bf16.mxu0 %v4960_v29 }
 0x21c   :  { %3421 = vmatpush1.bf16.msra.mxu0 %v4958_v31 }
 0x21d   :  { %3422 = vmatprep.subr.bf16.mxu0 %v4963_v32 }
 0x220   :  { %3423 = vmatpush1.bf16.msra.mxu0 %v4961_v33 }
 0x221   :  { %3424 = vmatprep.subr.bf16.mxu0 %v4966_v9 }
 0x224   :  { %3425 = vmatpush1.bf16.msra.mxu0 %v4964_v62 }
 0x225   :  { %3426 = vmatprep.subr.bf16.mxu0 %v4969_v34 }
 0x228   :  { %3427 = vmatpush1.bf16.msra.mxu0 %v4967_v35 }
 0x229   :  { %3428 = vmatprep.subr.bf16.mxu0 %v4972_v36 }
 0x22c   :  { %3429 = vmatpush1.bf16.msra.mxu0 %v4970_v37  ;;  %v4979_v37 = vld [vmem:[%s6445_s5 + $0x100] ss:$8 sps:$4 sm:$0xff]  }
 0x22d   :  { %3430 = vmatprep.subr.bf16.mxu0 %v4975_v38  ;;  %v4984_v38 = vld [vmem:[%s6445_s5 + $0x114] ss:$8 sps:$4 sm:$0xff]  }
 0x230   :  { %3431 = vmatpush1.bf16.msra.mxu0 %v4973_v39  ;;  %v4982_v39 = vld [vmem:[%s6445_s5 + $0x110] ss:$8 sps:$4 sm:$0xff]  }
 0x231   :  { %3432 = vmatprep.subr.bf16.mxu0 %v4978_v40  ;;  %v4987_v40 = vld [vmem:[%s6445_s5 + $0x124] ss:$8 sps:$4 sm:$0xff]  }
 0x234   :  { %3433 = vmatpush1.bf16.msra.mxu0 %v4976_v41  ;;  %v4985_v41 = vld [vmem:[%s6445_s5 + $0x120] ss:$8 sps:$4 sm:$0xff]  }
 0x235   :  { %3445 = vmatprep.subr.bf16.mxu0 %v4981_v42  ;;  %v4990_v42 = vld [vmem:[%s6445_s5 + $0x134] ss:$8 sps:$4 sm:$0xff]  }
 0x27f   :  { %v4299_v55 = vpop.f32.mrb[16].mxu0 }
 0x280   :  { %v4300_v56 = vpop.f32.mrb[17].mxu0 }
 0x281   :  { %v4301_v57 = vadd.f32 %v4300_v56, %v4299_v55  ;;  %v4302_v59 = vpop.f32.mrb[18].mxu0 }
 0x282   :  { %v4303_v63 = vpop.f32.mrb[19].mxu0 }
 0x283   :  { %v4304_v0 = vadd.f32 %v4303_v63, %v4302_v59  ;;  %v3049_v6 = vadd.f32 %v4301_v57, %v2347_v2 }
 0x285   :  { %v3052_v46 = vadd.f32 %v4304_v0, %v2347_v2 }
 0x29f   :  { %v4321_v3 = vpop.f32.mrb[20].mxu0 }
 0x2a0   :  { %v4322_v4 = vpop.f32.mrb[21].mxu0 }
 0x2a1   :  { %v4323_v7 = vadd.f32 %v4322_v4, %v4321_v3  ;;  %v4324_v8 = vpop.f32.mrb[22].mxu0 }
 0x2a2   :  { %v4325_v10 = vpop.f32.mrb[23].mxu0 }
 0x2a3   :  { %v4326_v13 = vadd.f32 %v4325_v10, %v4324_v8  ;;  %v3090_v11 = vadd.f32 %v4323_v7, %v3049_v6  ;;  %v5009_v7 = vld [vmem:[%s6448_s9 + $0x10] sm:$0xff]   ;;  %v5010_v8 = vld [vmem:[%s6448_s9 + $0x18] sm:$0xff]   ;;  %v5011_v10 = vld [vmem:[%s6448_s9 + $0x20] sm:$0xff]  }
 0x2a5   :  { %v3093_v14 = vadd.f32 %v4326_v13, %v3052_v46  ;;  %v5012_v46 = vld [vmem:[%s6448_s9 + $0x28] sm:$0xff]   ;;  %v5013_v13 = vld [vmem:[%s6448_s9 + $0x30] sm:$0xff]  }
 0x2ca   :  { %v3130_v18 = vpop.f32.mrb[24].mxu0 }
 0x2cb   :  { %v3131_v19 = vadd.f32 %v3130_v18, %v3090_v11  ;;  %v3005_v20 = vpop.f32.mrb[12].mxu1  ;;  %v4370_v30 = vpop.f32.mrb[25].mxu0  ;;  %v5014_v11 = vld [vmem:[%s6448_s9 + $0x38] sm:$0xff]  }
 0x2cc   :  { %v4404_v58 = vadd.f32 %v3005_v20, %v2339_v16  ;;  %v3007_v1 = vpop.f32.mrb[13].mxu1  ;;  %v3133_v21 = vpop.f32.mrb[26].mxu0 }
 0x2cd   :  { %v4405_v22 = vadd.f32 %v3007_v1, %v2343_v17  ;;  %v3134_v23 = vadd.f32 %v3133_v21, %v3093_v14  ;;  %v3009_v24 = vpop.f32.mrb[14].mxu1  ;;  %v4371_v25 = vpop.f32.mrb[27].mxu0  ;;  %v3139_v28 = vmax.f32 %v3131_v19, 0.0 }
 0x2ce   :  { %v4406_v26 = vadd.f32 %v3009_v24, %v2339_v16  ;;  %v3011_v27 = vpop.f32.mrb[15].mxu1  ;;  %v3137_v32 = vmax.f32 %v4404_v58, 0.0  ;;  %v4189_v16 = vld [vmem:[%s6450_s8] ss:$0 sm:$0xff] }
 0x2cf   :  { %v3142_v29 = vmax.f32 %v3134_v23, 0.0  ;;  %v4407_v31 = vadd.f32 %v3011_v27, %v2343_v17  ;;  %v3138_v9 = vmax.f32 %v4405_v22, 0.0  ;;  %v4206_v23 = vld [vmem:[%s6451_s10] ss:$0 sm:$0xff] }
 0x2d0   :  { %v3140_v33 = vmax.f32 %v4406_v26, 0.0 }
 0x2d1   :  { %v3145_v62 = vpack.c.bf16 %v3142_v29, %v3139_v28  ;;  %v3141_v34 = vmax.f32 %v4407_v31, 0.0 }
 0x2d2   :  { %v3143_v35 = vpack.c.bf16 %v3140_v33, %v3137_v32 }
 0x2d3   :  { %v3144_v36 = vpack.c.bf16 %v3141_v34, %v3138_v9 }
 0x2d5   :  { %3434 = vmatprep.mubr.bf16.mxu0 %v3144_v36 }
 0x2d6   :  { %3435 = vmatmul.mubr.bf16.vlgmr.msra.gmra.mrb[28].mxu0 %v3143_v35 }
 0x2d7   :  { %3446 = vmatpush1.bf16.msra.mxu0 %v4979_v37  ;;  %3477 = vmatprep.mubr.bf16.mxu0 %v5017_v15  ;;  %v4988_v15 = vld [vmem:[%s6445_s5 + $0x130] ss:$8 sps:$4 sm:$0xff]  }
 0x2d8   :  { %3447 = vmatprep.subr.bf16.mxu0 %v4984_v38 }
 0x2db   :  { %3448 = vmatpush1.bf16.msra.mxu0 %v4982_v39 }
 0x2dc   :  { %3449 = vmatprep.subr.bf16.mxu0 %v4987_v40 }
 0x2df   :  { %3450 = vmatpush1.bf16.msra.mxu0 %v4985_v41 }
 0x2e0   :  { %3451 = vmatprep.subr.bf16.mxu0 %v4990_v42 }
 0x2e3   :  { %3452 = vmatpush1.bf16.msra.mxu0 %v4988_v15 }
 0x2e6   :  { %4188 = vmatmul.mubr.msk.bf16.vlgmr.msra.gmra.mrb[28].mxu0 %vm3398_vm4, %v3145_v62 }
 0x3b9   :  { %v3479_v52 = vpop.f32.mrb[28].mxu0 }
 0x3ba   :  { %v4408_v53 = vadd.f32 %v3479_v52, %v3191_v50  ;;  %v3481_v54 = vpop.f32.mrb[29].mxu0 }
 0x3bb   :  { %v4409_v55 = vadd.f32 %v3481_v54, %v3195_v51  ;;  %v3483_v56 = vpop.f32.mrb[30].mxu0 }
 0x3bc   :  { %v4410_v57 = vadd.f32 %v3483_v56, %v3191_v50  ;;  %v3485_v59 = vpop.f32.mrb[31].mxu0  ;;  %v3488_v0 = vmax.f32 %v4408_v53, 0.0 }
 0x3bd   :  { %v4411_v63 = vadd.f32 %v3485_v59, %v3195_v51  ;;  %v3489_v2 = vmax.f32 %v4409_v55, 0.0 }
 0x3be   :  { %v3490_v12 = vmax.f32 %v4410_v57, 0.0 }
 0x3bf   :  { %v3491_v3 = vmax.f32 %v4411_v63, 0.0 }
 0x3c0   :  { %v3492_v4 = vpack.c.bf16 %v3490_v12, %v3488_v0 }
 0x3c1   :  { %v3493_v6 = vpack.c.bf16 %v3491_v3, %v3489_v2 }
 0x3c3   :  { %3661 = vmatprep.mubr.bf16.mxu1 %v3493_v6 }
 0x3c4   :  { %3662 = vmatmul.mubr.bf16.vlgmr.msra.gmra.mrb[16].mxu1 %v3492_v4 }
 0x3c5   :  { %4373 = vmatpush3.bf16.msra.mxu1 %v5007_v60  ;;  %4388 = vmatprep.mubr.msk.bf16.mxu1 %vm5019_vm1, %v5018_v44 }
 0x3c6   :  { %4374 = vmatprep.subr.bf16.mxu1 %v5018_v44 }
 0x3c9   :  { %4375 = vmatpush3.bf16.msra.mxu1 %v5008_v61 }
 0x3ca   :  { %4376 = vmatprep.subr.bf16.mxu1 %v5018_v44 }
 0x3cd   :  { %4377 = vmatpush3.bf16.msra.mxu1 %v5009_v7 }
 0x3ce   :  { %4378 = vmatprep.subr.bf16.mxu1 %v5018_v44 }
 0x3d1   :  { %4379 = vmatpush3.bf16.msra.mxu1 %v5010_v8 }
 0x3d2   :  { %4380 = vmatprep.subr.bf16.mxu1 %v5018_v44 }
 0x3d5   :  { %4381 = vmatpush3.bf16.msra.mxu1 %v5011_v10 }
 0x3d6   :  { %4382 = vmatprep.subr.bf16.mxu1 %v5018_v44 }
 0x3d9   :  { %4383 = vmatpush3.bf16.msra.mxu1 %v5012_v46 }
 0x3da   :  { %4384 = vmatprep.subr.bf16.mxu1 %v5018_v44 }
 0x3dd   :  { %4385 = vmatpush3.bf16.msra.mxu1 %v5013_v13 }
 0x3de   :  { %4386 = vmatprep.subr.bf16.mxu1 %v5018_v44 }
 0x3e1   :  { %4387 = vmatpush3.bf16.msra.mxu1 %v5014_v11 }
 0x497   :  { %v4345_v14 = vpop.f32.mrb[16].mxu1 }
 0x498   :  { %v4346_v17 = vpop.f32.mrb[17].mxu1 }
 0x499   :  { %v4347_v18 = vadd.f32 %v4346_v17, %v4345_v14  ;;  %v4348_v19 = vpop.f32.mrb[18].mxu1 }
 0x49a   :  { %v4349_v20 = vpop.f32.mrb[19].mxu1 }
 0x49b   :  { %v3664_v30 = vadd.f32 %v4347_v18, %v4189_v16  ;;  %v4350_v58 = vadd.f32 %v4349_v20, %v4348_v19 }
 0x49d   :  { %v3667_v1 = vadd.f32 %v4350_v58, %v4189_v16  ;;  %v3670_v21 = vmax.f32 %v3664_v30, 0.0 }
 0x49f   :  { %v3671_v22 = vmax.f32 %v3667_v1, 0.0 }
 0x4a1   :  { %v3672_v44 = vpack.c.bf16 %v3671_v22, %v3670_v21 }
 0x4a3   :  { %4389 = vmatmul.mubr.bf16.vlgmr.msra.gmra.mrb[20].mxu1 %v3672_v44 }
 0x576   :  { %v3778_v24 = vpop.f32.mrb[20].mxu1 }
 0x577   :  { %v3779_v25 = vadd.f32 %v4206_v23, %v3778_v24  ;;  %v4390_v26 = vpop.f32.mrb[21].mxu1 }
 0x578   :  { %v3781_v27 = vpop.f32.mrb[22].mxu1 }
 0x579   :  { %3785 = vst [vmem:[%s6452_s11] sm:$0xff] %v3779_v25  ;;  %v3782_v28 = vadd.f32 %v4206_v23, %v3781_v27  ;;  %v4391_v29 = vpop.f32.mrb[23].mxu1 }
 0x57b   :  { %3786 = vst [vmem:[%s6452_s11 + $0x8] sm:$0xff] %v3782_v28 }

</bundles_post_ra>
